<compile_context>
chip_gen: v7x
topology: tpu7x:2x2x1
jax: 0.10.0
libtpu: 0.0.40
codegen_flags: <defaults>
</compile_context>

<pallas_src>
import jax
import jax.numpy as jnp
from jax import lax
from jax.experimental import pallas as pl
from jax.experimental.pallas import tpu as pltpu

BN_EPS = 1e-5


# ---------------------------------------------------------------------------
# Wrapper-side weight preparation (tiny, runs under jit)
# ---------------------------------------------------------------------------
def _banded_weights(w_hwio, width):
    """Fold the kx taps + width zero-padding of a 3x3 conv into banded matrices.

    Returns T of shape (3, W*Ci, W*Co) with
        T[ky, w_in*Ci + ci, w_out*Co + co] = w_hwio[ky, w_in - w_out + 1, ci, co]
    for |w_in - w_out| <= 1, else 0.  One folded activation row (W*Ci,) times
    T[ky] yields that row's contribution of vertical tap ky to the folded
    output row (W*Co,) -- i.e. one lane-dense MXU matmul per ky instead of
    nine K=Cin matmuls over shifted slices.
    """
    kh, kw, ci, co = w_hwio.shape
    w_in = jnp.arange(width)[:, None]
    w_out = jnp.arange(width)[None, :]
    tap = w_in - w_out + 1                       # kx index for this (w_in, w_out)
    valid = (tap >= 0) & (tap < kw)
    tap = jnp.clip(tap, 0, kw - 1)
    blocks = w_hwio[:, tap] * valid[None, :, :, None, None].astype(w_hwio.dtype)
    # (kh, W, W, Ci, Co) -> (kh, W, Ci, W, Co) -> (kh, W*Ci, W*Co)
    return blocks.transpose(0, 1, 3, 2, 4).reshape(kh, width * ci, width * co)


# ---------------------------------------------------------------------------
# Kernels
# ---------------------------------------------------------------------------
def _conv_stats_kernel(x_ref, t_ref, y_ref, stats_ref):
    """nb images: 3x3 conv as 3 banded lane-dense matmuls per image + partial
    BN statistics (summed over the whole batch block).

    x_ref    : (nb, H+2, W*Ci)  folded input, zero halo rows at 0 and H+1
    t_ref    : (3, W*Ci, W*Co)  banded weight matrices (one per ky tap)
    y_ref    : (nb, H+2, W*Co)  folded pre-BN conv output, halo rows zeroed
    stats_ref: (1, 2, W*Co)     partial [sum, sum_of_squares] over the block
    """
    nb, hp, _ = x_ref.shape
    h = hp - 2
    w_co = y_ref.shape[2]

    taps = [t_ref[ky].astype(jnp.float32) for ky in range(3)]   # hoisted loads
    zero_row = jnp.zeros((1, w_co), y_ref.dtype)
    ssum = jnp.zeros((1, w_co), jnp.float32)
    ssq = jnp.zeros((1, w_co), jnp.float32)

    for b in range(nb):                                         # static unroll
        v = x_ref[b].astype(jnp.float32)                        # (H+2, W*Ci)
        acc = jnp.zeros((h, w_co), jnp.float32)
        for ky in range(3):
            acc = acc + jnp.dot(v[ky:ky + h, :], taps[ky],
                                preferred_element_type=jnp.float32)
        # (conv bias intentionally omitted: train-mode BatchNorm cancels it)
        y_ref[b, 1:h + 1, :] = acc.astype(y_ref.dtype)
        y_ref[b, 0:1, :] = zero_row
        y_ref[b, h + 1:h + 2, :] = zero_row
        ssum = ssum + jnp.sum(acc, axis=0, keepdims=True)
        ssq = ssq + jnp.sum(acc * acc, axis=0, keepdims=True)

    stats_ref[0, 0:1, :] = ssum
    stats_ref[0, 1:2, :] = ssq


def _bnrelu_conv_stats_kernel(x_ref, scale_ref, shift_ref, t_ref, y_ref,
                              stats_ref):
    """nb images: fused BN+ReLU of the previous conv -> 3x3 conv (3 banded
    lane-dense matmuls) -> partial BN statistics over the block.

    x_ref    : (nb, H+2, W*Ci)  folded *pre-BN* output of the previous conv
    scale_ref: (1, W*Ci)        fused BN scale of the previous layer (w-tiled)
    shift_ref: (1, W*Ci)        fused BN shift of the previous layer (w-tiled)
    t_ref    : (3, W*Ci, W*Co)
    y_ref    : (nb, H+2, W*Co)
    stats_ref: (1, 2, W*Co)
    """
    nb, hp, w_ci = x_ref.shape
    h = hp - 2
    w_co = y_ref.shape[2]

    taps = [t_ref[ky].astype(jnp.float32) for ky in range(3)]
    scale = scale_ref[...]                                      # (1, W*Ci)
    shift = shift_ref[...]
    # halo rows must stay zero *after* BN+ReLU (relu(shift) is nonzero on the
    # zero-padded rows); build the interior mask once for the whole block.
    row = lax.broadcasted_iota(jnp.int32, (hp, w_ci), 0)
    interior = (row >= 1) & (row <= h)
    zero_row = jnp.zeros((1, w_co), y_ref.dtype)
    ssum = jnp.zeros((1, w_co), jnp.float32)
    ssq = jnp.zeros((1, w_co), jnp.float32)

    for b in range(nb):
        v = x_ref[b].astype(jnp.float32)                        # (H+2, W*Ci)
        v = jnp.maximum(v * scale + shift, 0.0)                 # fused BN+ReLU
        v = jnp.where(interior, v, 0.0)                         # re-zero halos
        acc = jnp.zeros((h, w_co), jnp.float32)
        for ky in range(3):
            acc = acc + jnp.dot(v[ky:ky + h, :], taps[ky],
                                preferred_element_type=jnp.float32)
        y_ref[b, 1:h + 1, :] = acc.astype(y_ref.dtype)
        y_ref[b, 0:1, :] = zero_row
        y_ref[b, h + 1:h + 2, :] = zero_row
        ssum = ssum + jnp.sum(acc, axis=0, keepdims=True)
        ssq = ssq + jnp.sum(acc * acc, axis=0, keepdims=True)

    stats_ref[0, 0:1, :] = ssum
    stats_ref[0, 1:2, :] = ssq


def _bn_relu_kernel(y_ref, scale_ref, shift_ref, out_ref):
    """Final BatchNorm + ReLU on the folded (nb, H, W*Co) lane-dense layout."""
    h = out_ref.shape[1]
    v = y_ref[...].astype(jnp.float32)[:, 1:h + 1, :]           # drop halos
    out_ref[...] = jnp.maximum(v * scale_ref[...] + shift_ref[...], 0.0
                               ).astype(out_ref.dtype)


# ---------------------------------------------------------------------------
# pallas_call wrappers
# ---------------------------------------------------------------------------
def _compiler_params():
    # Blocks are KB-scale; 32 MiB scoped VMEM is safely inside every
    # generation's budget (v7x: 64 MiB physical).  The batch grid axis is
    # independent per step -> "parallel" lets v7x's two TensorCores split it
    # (harmless no-op on single-TC v5e/v6e).
    return pltpu.CompilerParams(
        dimension_semantics=("parallel",),
        vmem_limit_bytes=32 * 1024 * 1024,
    )


def _conv_stats_call(x_padded, t_banded, nb):
    n, hp, w_ci = x_padded.shape
    w_co = t_banded.shape[2]
    gb = n // nb
    return pl.pallas_call(
        _conv_stats_kernel,
        out_shape=(
            jax.ShapeDtypeStruct((n, hp, w_co), jnp.float32),   # padded pre-BN conv
            jax.ShapeDtypeStruct((gb, 2, w_co), jnp.float32),   # partial BN stats
        ),
        grid=(gb,),
        in_specs=[
            pl.BlockSpec((nb, hp, w_ci), lambda i: (i, 0, 0)),
            pl.BlockSpec((3, w_ci, w_co), lambda i: (0, 0, 0)),
        ],
        out_specs=(
            pl.BlockSpec((nb, hp, w_co), lambda i: (i, 0, 0)),
            pl.BlockSpec((1, 2, w_co), lambda i: (i, 0, 0)),
        ),
        compiler_params=_compiler_params(),
    )(x_padded, t_banded)


def _bnrelu_conv_stats_call(x_padded, scale_t, shift_t, t_banded, nb):
    n, hp, w_ci = x_padded.shape
    w_co = t_banded.shape[2]
    gb = n // nb
    return pl.pallas_call(
        _bnrelu_conv_stats_kernel,
        out_shape=(
            jax.ShapeDtypeStruct((n, hp, w_co), jnp.float32),
            jax.ShapeDtypeStruct((gb, 2, w_co), jnp.float32),
        ),
        grid=(gb,),
        in_specs=[
            pl.BlockSpec((nb, hp, w_ci), lambda i: (i, 0, 0)),
            pl.BlockSpec((1, w_ci), lambda i: (0, 0)),
            pl.BlockSpec((1, w_ci), lambda i: (0, 0)),
            pl.BlockSpec((3, w_ci, w_co), lambda i: (0, 0, 0)),
        ],
        out_specs=(
            pl.BlockSpec((nb, hp, w_co), lambda i: (i, 0, 0)),
            pl.BlockSpec((1, 2, w_co), lambda i: (i, 0, 0)),
        ),
        compiler_params=_compiler_params(),
    )(x_padded, scale_t, shift_t, t_banded)


def _bn_relu_call(y_padded, scale_t, shift_t, nb):
    n, hp, w_co = y_padded.shape
    h = hp - 2
    gb = n // nb
    return pl.pallas_call(
        _bn_relu_kernel,
        out_shape=jax.ShapeDtypeStruct((n, h, w_co), jnp.float32),
        grid=(gb,),
        in_specs=[
            pl.BlockSpec((nb, hp, w_co), lambda i: (i, 0, 0)),
            pl.BlockSpec((1, w_co), lambda i: (0, 0)),
            pl.BlockSpec((1, w_co), lambda i: (0, 0)),
        ],
        out_specs=pl.BlockSpec((nb, h, w_co), lambda i: (i, 0, 0)),
        compiler_params=_compiler_params(),
    )(y_padded, scale_t, shift_t)


def _bn_affine(stats, gamma, beta, count, width, c_out):
    """Finish BN batch statistics from the per-block partial sums and fold
    gamma/beta into a scale/shift tiled to the folded (W*Cout) lane layout."""
    s = stats.reshape(-1, 2, width, c_out).sum(axis=(0, 2))     # (2, Cout)
    mean = s[0] / count
    var = jnp.maximum(s[1] / count - mean * mean, 0.0)          # biased (PyTorch)
    scale_c = gamma * lax.rsqrt(var + BN_EPS)
    shift_c = beta - mean * scale_c
    return jnp.tile(scale_c, width)[None, :], jnp.tile(shift_c, width)[None, :]


def _pick_batch_block(n, cap=8):
    nb = min(n, cap)
    while n % nb:
        nb -= 1
    return nb


def double_conv(x_nchw, params):
    """DoubleConv forward.  Input/output are NCHW (PyTorch convention)."""
    # TODO(synk): BatchNorm running_mean/running_var momentum updates are a
    # training-time buffer side effect; the forward output only uses batch
    # statistics, so they are not materialized here.
    n, c_in, h, w = x_nchw.shape
    c_out = params["g1"].shape[0]
    nb = _pick_batch_block(n)

    # NCHW -> channels-last, folded so the lane dim is W*C (lane-dense:
    # W*Cout = 128 here); pre-pad H with one zero row on each side for conv1.
    x = jnp.transpose(x_nchw, (0, 2, 3, 1)).reshape(n, h, w * c_in)
    x = jnp.pad(x, ((0, 0), (1, 1), (0, 0)))

    t1 = _banded_weights(params["w1"].astype(jnp.float32), w)
    t2 = _banded_weights(params["w2"].astype(jnp.float32), w)
    count = n * h * w

    # conv1 + partial BN1 stats  (conv bias dropped: cancelled by train BN)
    y1, st1 = _conv_stats_call(x, t1, nb)
    s1, b1 = _bn_affine(st1, params["g1"], params["be1"], count, w, c_out)

    # BN1 + ReLU fused into conv2 + partial BN2 stats (h1 never hits HBM)
    y2, st2 = _bnrelu_conv_stats_call(y1, s1, b1, t2, nb)
    s2, b2 = _bn_affine(st2, params["g2"], params["be2"], count, w, c_out)

    # final BN2 + ReLU, then unfold back to NCHW
    out = _bn_relu_call(y2, s2, b2, nb)                          # (N, H, W*Cout)
    out = out.reshape(n, h, w, c_out)
    return jnp.transpose(out, (0, 3, 1, 2))


# ---------------- pure-JAX reference for correctness check -----------------
def _ref_block(x_nchw, w_oihw, bias, gamma, beta):
    y = lax.conv_general_dilated(
        x_nchw, w_oihw, window_strides=(1, 1), padding="SAME",
        dimension_numbers=("NCHW", "OIHW", "NCHW"))
    y = y + bias[None, :, None, None]
    mean = jnp.mean(y, axis=(0, 2, 3), keepdims=True)
    var = jnp.mean((y - mean) ** 2, axis=(0, 2, 3), keepdims=True)
    y = (y - mean) * lax.rsqrt(var + BN_EPS)
    y = y * gamma[None, :, None, None] + beta[None, :, None, None]
    return jnp.maximum(y, 0.0)


def double_conv_ref(x_nchw, p):
    h = _ref_block(x_nchw, p["w1_oihw"], p["b1"], p["g1"], p["be1"])
    return _ref_block(h, p["w2_oihw"], p["b2"], p["g2"], p["be2"])


if __name__ == "__main__":
    # Small shapes consistent with DoubleConv(in_channels=4, out_channels=8)
    N, Cin, Cout, H, W = 2, 4, 8, 16, 16

    key = jax.random.PRNGKey(0)
    k = jax.random.split(key, 9)

    # Deterministic synthetic parameters (PyTorch conv weight layout is OIHW).
    w1_oihw = 0.1 * jax.random.normal(k[0], (Cout, Cin, 3, 3), jnp.float32)
    b1 = 0.1 * jax.random.normal(k[1], (Cout,), jnp.float32)
    g1 = 1.0 + 0.1 * jax.random.normal(k[2], (Cout,), jnp.float32)
    be1 = 0.1 * jax.random.normal(k[3], (Cout,), jnp.float32)

    w2_oihw = 0.1 * jax.random.normal(k[4], (Cout, Cout, 3, 3), jnp.float32)
    b2 = 0.1 * jax.random.normal(k[5], (Cout,), jnp.float32)
    g2 = 1.0 + 0.1 * jax.random.normal(k[6], (Cout,), jnp.float32)
    be2 = 0.1 * jax.random.normal(k[7], (Cout,), jnp.float32)

    params = {
        # HWIO for the Pallas path
        "w1": jnp.transpose(w1_oihw, (2, 3, 1, 0)),
        "w2": jnp.transpose(w2_oihw, (2, 3, 1, 0)),
        "g1": g1, "be1": be1, "g2": g2, "be2": be2,
        # conv biases: used only by the reference (train-mode BN cancels them)
        "b1": b1, "b2": b2,
        # OIHW kept for the reference check
        "w1_oihw": w1_oihw, "w2_oihw": w2_oihw,
    }

    x = jax.random.normal(k[8], (N, Cin, H, W), jnp.float32)

    out = jax.block_until_ready(jax.jit(double_conv)(x, params))
    ref = jax.block_until_ready(double_conv_ref(x, params))

    assert out.shape == (N, Cout, H, W), out.shape
    max_err = float(jnp.max(jnp.abs(out - ref)))
    assert jnp.allclose(out, ref, atol=1e-3, rtol=1e-3), max_err

    print("KERNEL_OK")
</pallas_src>

<mosaic_0001>
module attributes {stable_mosaic.version = 11 : i64} {
  func.func @_conv_stats_kernel(%arg0: i32, %arg1: memref<2x18x64xf32, #tpu.memory_space<vmem>>, %arg2: memref<3x64x128xf32, #tpu.memory_space<vmem>>, %arg3: memref<2x18x128xf32, #tpu.memory_space<vmem>>, %arg4: memref<1x2x128xf32, #tpu.memory_space<vmem>>) attributes {dimension_semantics = [#tpu.dimension_semantics<parallel>], iteration_bounds = array<i64: 1>, scalar_prefetch = 0 : i64, scratch_operands = 0 : i64, tpu.core_type = #tpu.core_type<tc>, window_params = [{transform_indices = @transform_0, window_bounds = array<i64: 2, 18, 64>}, {pipeline_mode = #tpu.pipeline_mode<synchronous>, transform_indices = @transform_1, window_bounds = array<i64: 3, 64, 128>}, {transform_indices = @transform_2, window_bounds = array<i64: 2, 18, 128>}, {transform_indices = @transform_3, window_bounds = array<i64: 1, 2, 128>}]} {
    %c0 = arith.constant 0 : index
    %c0_0 = arith.constant 0 : index
    %c0_1 = arith.constant 0 : index
    %0 = vector.load %arg2[%c0, %c0_0, %c0_1] : memref<3x64x128xf32, #tpu.memory_space<vmem>>, vector<1x64x128xf32>
    %1 = vector.shape_cast %0 : vector<1x64x128xf32> to vector<64x128xf32>
    %c1 = arith.constant 1 : index
    %c0_2 = arith.constant 0 : index
    %c0_3 = arith.constant 0 : index
    %2 = vector.load %arg2[%c1, %c0_2, %c0_3] : memref<3x64x128xf32, #tpu.memory_space<vmem>>, vector<1x64x128xf32>
    %3 = vector.shape_cast %2 : vector<1x64x128xf32> to vector<64x128xf32>
    %c2 = arith.constant 2 : index
    %c0_4 = arith.constant 0 : index
    %c0_5 = arith.constant 0 : index
    %4 = vector.load %arg2[%c2, %c0_4, %c0_5] : memref<3x64x128xf32, #tpu.memory_space<vmem>>, vector<1x64x128xf32>
    %5 = vector.shape_cast %4 : vector<1x64x128xf32> to vector<64x128xf32>
    %cst = arith.constant 0.000000e+00 : f32
    %6 = vector.broadcast %cst : f32 to vector<1x128xf32>
    %cst_6 = arith.constant 0.000000e+00 : f32
    %7 = vector.broadcast %cst_6 : f32 to vector<1x128xf32>
    %cst_7 = arith.constant 0.000000e+00 : f32
    %8 = vector.broadcast %cst_7 : f32 to vector<1x128xf32>
    %c0_8 = arith.constant 0 : index
    %c0_9 = arith.constant 0 : index
    %c0_10 = arith.constant 0 : index
    %9 = vector.load %arg1[%c0_8, %c0_9, %c0_10] : memref<2x18x64xf32, #tpu.memory_space<vmem>>, vector<1x18x64xf32>
    %10 = vector.shape_cast %9 : vector<1x18x64xf32> to vector<18x64xf32>
    %cst_11 = arith.constant 0.000000e+00 : f32
    %11 = vector.broadcast %cst_11 : f32 to vector<16x128xf32>
    %12 = vector.extract_strided_slice %10 {offsets = [0, 0], sizes = [16, 64], strides = [1, 1]} : vector<18x64xf32> to vector<16x64xf32>
    %cst_12 = arith.constant dense<0.000000e+00> : vector<16x128xf32>
    %13 = tpu.matmul %12, %1, %cst_12 {dimension_numbers = #tpu.dot_dimension_numbers<[1], [0], [0], [1], [0, 0, 1, 1], [], []>} : vector<16x64xf32>, vector<64x128xf32>, vector<16x128xf32> -> vector<16x128xf32>
    %14 = arith.addf %11, %13 : vector<16x128xf32>
    %15 = vector.extract_strided_slice %10 {offsets = [1, 0], sizes = [16, 64], strides = [1, 1]} : vector<18x64xf32> to vector<16x64xf32>
    %cst_13 = arith.constant dense<0.000000e+00> : vector<16x128xf32>
    %16 = tpu.matmul %15, %3, %cst_13 {dimension_numbers = #tpu.dot_dimension_numbers<[1], [0], [0], [1], [0, 0, 1, 1], [], []>} : vector<16x64xf32>, vector<64x128xf32>, vector<16x128xf32> -> vector<16x128xf32>
    %17 = arith.addf %14, %16 : vector<16x128xf32>
    %18 = vector.extract_strided_slice %10 {offsets = [2, 0], sizes = [16, 64], strides = [1, 1]} : vector<18x64xf32> to vector<16x64xf32>
    %cst_14 = arith.constant dense<0.000000e+00> : vector<16x128xf32>
    %19 = tpu.matmul %18, %5, %cst_14 {dimension_numbers = #tpu.dot_dimension_numbers<[1], [0], [0], [1], [0, 0, 1, 1], [], []>} : vector<16x64xf32>, vector<64x128xf32>, vector<16x128xf32> -> vector<16x128xf32>
    %20 = arith.addf %17, %19 : vector<16x128xf32>
    %c0_15 = arith.constant 0 : index
    %c1_16 = arith.constant 1 : index
    %c0_17 = arith.constant 0 : index
    %21 = vector.load %arg3[%c0_15, %c1_16, %c0_17] : memref<2x18x128xf32, #tpu.memory_space<vmem>>, vector<1x16x128xf32>
    %22 = vector.shape_cast %21 : vector<1x16x128xf32> to vector<16x128xf32>
    %23 = vector.shape_cast %20 : vector<16x128xf32> to vector<1x16x128xf32>
    tpu.vector_store %arg3[%c0_15, %c1_16, %c0_17], %23 {strides = array<i32>} : memref<2x18x128xf32, #tpu.memory_space<vmem>>, vector<1x16x128xf32>,
    %c0_18 = arith.constant 0 : index
    %c0_19 = arith.constant 0 : index
    %c0_20 = arith.constant 0 : index
    %24 = vector.load %arg3[%c0_18, %c0_19, %c0_20] : memref<2x18x128xf32, #tpu.memory_space<vmem>>, vector<1x1x128xf32>
    %25 = vector.shape_cast %24 : vector<1x1x128xf32> to vector<1x128xf32>
    %26 = vector.shape_cast %6 : vector<1x128xf32> to vector<1x1x128xf32>
    tpu.vector_store %arg3[%c0_18, %c0_19, %c0_20], %26 {strides = array<i32>} : memref<2x18x128xf32, #tpu.memory_space<vmem>>, vector<1x1x128xf32>,
    %c0_21 = arith.constant 0 : index
    %c17 = arith.constant 17 : index
    %c0_22 = arith.constant 0 : index
    %27 = vector.load %arg3[%c0_21, %c17, %c0_22] : memref<2x18x128xf32, #tpu.memory_space<vmem>>, vector<1x1x128xf32>
    %28 = vector.shape_cast %27 : vector<1x1x128xf32> to vector<1x128xf32>
    %29 = vector.shape_cast %6 : vector<1x128xf32> to vector<1x1x128xf32>
    tpu.vector_store %arg3[%c0_21, %c17, %c0_22], %29 {strides = array<i32>} : memref<2x18x128xf32, #tpu.memory_space<vmem>>, vector<1x1x128xf32>,
    %cst_23 = arith.constant dense<0.000000e+00> : vector<128xf32>
    %30 = vector.multi_reduction <add>, %20, %cst_23 [0] : vector<16x128xf32> to vector<128xf32>
    %31 = vector.shape_cast %30 : vector<128xf32> to vector<1x128xf32>
    %32 = arith.addf %7, %31 : vector<1x128xf32>
    %33 = arith.mulf %20, %20 : vector<16x128xf32>
    %cst_24 = arith.constant dense<0.000000e+00> : vector<128xf32>
    %34 = vector.multi_reduction <add>, %33, %cst_24 [0] : vector<16x128xf32> to vector<128xf32>
    %35 = vector.shape_cast %34 : vector<128xf32> to vector<1x128xf32>
    %36 = arith.addf %8, %35 : vector<1x128xf32>
    %c1_25 = arith.constant 1 : index
    %c0_26 = arith.constant 0 : index
    %c0_27 = arith.constant 0 : index
    %37 = vector.load %arg1[%c1_25, %c0_26, %c0_27] : memref<2x18x64xf32, #tpu.memory_space<vmem>>, vector<1x18x64xf32>
    %38 = vector.shape_cast %37 : vector<1x18x64xf32> to vector<18x64xf32>
    %cst_28 = arith.constant 0.000000e+00 : f32
    %39 = vector.broadcast %cst_28 : f32 to vector<16x128xf32>
    %40 = vector.extract_strided_slice %38 {offsets = [0, 0], sizes = [16, 64], strides = [1, 1]} : vector<18x64xf32> to vector<16x64xf32>
    %cst_29 = arith.constant dense<0.000000e+00> : vector<16x128xf32>
    %41 = tpu.matmul %40, %1, %cst_29 {dimension_numbers = #tpu.dot_dimension_numbers<[1], [0], [0], [1], [0, 0, 1, 1], [], []>} : vector<16x64xf32>, vector<64x128xf32>, vector<16x128xf32> -> vector<16x128xf32>
    %42 = arith.addf %39, %41 : vector<16x128xf32>
    %43 = vector.extract_strided_slice %38 {offsets = [1, 0], sizes = [16, 64], strides = [1, 1]} : vector<18x64xf32> to vector<16x64xf32>
    %cst_30 = arith.constant dense<0.000000e+00> : vector<16x128xf32>
    %44 = tpu.matmul %43, %3, %cst_30 {dimension_numbers = #tpu.dot_dimension_numbers<[1], [0], [0], [1], [0, 0, 1, 1], [], []>} : vector<16x64xf32>, vector<64x128xf32>, vector<16x128xf32> -> vector<16x128xf32>
    %45 = arith.addf %42, %44 : vector<16x128xf32>
    %46 = vector.extract_strided_slice %38 {offsets = [2, 0], sizes = [16, 64], strides = [1, 1]} : vector<18x64xf32> to vector<16x64xf32>
    %cst_31 = arith.constant dense<0.000000e+00> : vector<16x128xf32>
    %47 = tpu.matmul %46, %5, %cst_31 {dimension_numbers = #tpu.dot_dimension_numbers<[1], [0], [0], [1], [0, 0, 1, 1], [], []>} : vector<16x64xf32>, vector<64x128xf32>, vector<16x128xf32> -> vector<16x128xf32>
    %48 = arith.addf %45, %47 : vector<16x128xf32>
    %c1_32 = arith.constant 1 : index
    %c1_33 = arith.constant 1 : index
    %c0_34 = arith.constant 0 : index
    %49 = vector.load %arg3[%c1_32, %c1_33, %c0_34] : memref<2x18x128xf32, #tpu.memory_space<vmem>>, vector<1x16x128xf32>
    %50 = vector.shape_cast %49 : vector<1x16x128xf32> to vector<16x128xf32>
    %51 = vector.shape_cast %48 : vector<16x128xf32> to vector<1x16x128xf32>
    tpu.vector_store %arg3[%c1_32, %c1_33, %c0_34], %51 {strides = array<i32>} : memref<2x18x128xf32, #tpu.memory_space<vmem>>, vector<1x16x128xf32>,
    %c1_35 = arith.constant 1 : index
    %c0_36 = arith.constant 0 : index
    %c0_37 = arith.constant 0 : index
    %52 = vector.load %arg3[%c1_35, %c0_36, %c0_37] : memref<2x18x128xf32, #tpu.memory_space<vmem>>, vector<1x1x128xf32>
    %53 = vector.shape_cast %52 : vector<1x1x128xf32> to vector<1x128xf32>
    %54 = vector.shape_cast %6 : vector<1x128xf32> to vector<1x1x128xf32>
    tpu.vector_store %arg3[%c1_35, %c0_36, %c0_37], %54 {strides = array<i32>} : memref<2x18x128xf32, #tpu.memory_space<vmem>>, vector<1x1x128xf32>,
    %c1_38 = arith.constant 1 : index
    %c17_39 = arith.constant 17 : index
    %c0_40 = arith.constant 0 : index
    %55 = vector.load %arg3[%c1_38, %c17_39, %c0_40] : memref<2x18x128xf32, #tpu.memory_space<vmem>>, vector<1x1x128xf32>
    %56 = vector.shape_cast %55 : vector<1x1x128xf32> to vector<1x128xf32>
    %57 = vector.shape_cast %6 : vector<1x128xf32> to vector<1x1x128xf32>
    tpu.vector_store %arg3[%c1_38, %c17_39, %c0_40], %57 {strides = array<i32>} : memref<2x18x128xf32, #tpu.memory_space<vmem>>, vector<1x1x128xf32>,
    %cst_41 = arith.constant dense<0.000000e+00> : vector<128xf32>
    %58 = vector.multi_reduction <add>, %48, %cst_41 [0] : vector<16x128xf32> to vector<128xf32>
    %59 = vector.shape_cast %58 : vector<128xf32> to vector<1x128xf32>
    %60 = arith.addf %32, %59 : vector<1x128xf32>
    %61 = arith.mulf %48, %48 : vector<16x128xf32>
    %cst_42 = arith.constant dense<0.000000e+00> : vector<128xf32>
    %62 = vector.multi_reduction <add>, %61, %cst_42 [0] : vector<16x128xf32> to vector<128xf32>
    %63 = vector.shape_cast %62 : vector<128xf32> to vector<1x128xf32>
    %64 = arith.addf %36, %63 : vector<1x128xf32>
    %c0_43 = arith.constant 0 : index
    %c0_44 = arith.constant 0 : index
    %c0_45 = arith.constant 0 : index
    %65 = vector.load %arg4[%c0_43, %c0_44, %c0_45] : memref<1x2x128xf32, #tpu.memory_space<vmem>>, vector<1x1x128xf32>
    %66 = vector.shape_cast %65 : vector<1x1x128xf32> to vector<1x128xf32>
    %67 = vector.shape_cast %60 : vector<1x128xf32> to vector<1x1x128xf32>
    tpu.vector_store %arg4[%c0_43, %c0_44, %c0_45], %67 {strides = array<i32>} : memref<1x2x128xf32, #tpu.memory_space<vmem>>, vector<1x1x128xf32>,
    %c0_46 = arith.constant 0 : index
    %c1_47 = arith.constant 1 : index
    %c0_48 = arith.constant 0 : index
    %68 = vector.load %arg4[%c0_46, %c1_47, %c0_48] : memref<1x2x128xf32, #tpu.memory_space<vmem>>, vector<1x1x128xf32>
    %69 = vector.shape_cast %68 : vector<1x1x128xf32> to vector<1x128xf32>
    %70 = vector.shape_cast %64 : vector<1x128xf32> to vector<1x1x128xf32>
    tpu.vector_store %arg4[%c0_46, %c1_47, %c0_48], %70 {strides = array<i32>} : memref<1x2x128xf32, #tpu.memory_space<vmem>>, vector<1x1x128xf32>,
    return
  }
  func.func @transform_0(%arg0: i32) -> (i32, i32, i32) {
    %c0_i32 = arith.constant 0 : i32
    %c0_i32_0 = arith.constant 0 : i32
    %c0_i32_1 = arith.constant 0 : i32
    return %arg0, %c0_i32, %c0_i32_0 : i32, i32, i32
  }
  func.func @transform_1(%arg0: i32) -> (i32, i32, i32) {
    %c0_i32 = arith.constant 0 : i32
    %c0_i32_0 = arith.constant 0 : i32
    %c0_i32_1 = arith.constant 0 : i32
    %c0_i32_2 = arith.constant 0 : i32
    return %c0_i32, %c0_i32_0, %c0_i32_1 : i32, i32, i32
  }
  func.func @transform_2(%arg0: i32) -> (i32, i32, i32) {
    %c0_i32 = arith.constant 0 : i32
    %c0_i32_0 = arith.constant 0 : i32
    %c0_i32_1 = arith.constant 0 : i32
    return %arg0, %c0_i32, %c0_i32_0 : i32, i32, i32
  }
  func.func @transform_3(%arg0: i32) -> (i32, i32, i32) {
    %c0_i32 = arith.constant 0 : i32
    %c0_i32_0 = arith.constant 0 : i32
    %c0_i32_1 = arith.constant 0 : i32
    return %arg0, %c0_i32, %c0_i32_0 : i32, i32, i32
  }
}

module attributes {stable_mosaic.version = 11 : i64} {
  func.func @_bnrelu_conv_stats_kernel(%arg0: i32, %arg1: memref<2x18x128xf32, #tpu.memory_space<vmem>>, %arg2: memref<1x128xf32, #tpu.memory_space<vmem>>, %arg3: memref<1x128xf32, #tpu.memory_space<vmem>>, %arg4: memref<3x128x128xf32, #tpu.memory_space<vmem>>, %arg5: memref<2x18x128xf32, #tpu.memory_space<vmem>>, %arg6: memref<1x2x128xf32, #tpu.memory_space<vmem>>) attributes {dimension_semantics = [#tpu.dimension_semantics<parallel>], iteration_bounds = array<i64: 1>, scalar_prefetch = 0 : i64, scratch_operands = 0 : i64, tpu.core_type = #tpu.core_type<tc>, window_params = [{transform_indices = @transform_0, window_bounds = array<i64: 2, 18, 128>}, {pipeline_mode = #tpu.pipeline_mode<synchronous>, transform_indices = @transform_1, window_bounds = array<i64: 1, 128>}, {pipeline_mode = #tpu.pipeline_mode<synchronous>, transform_indices = @transform_2, window_bounds = array<i64: 1, 128>}, {pipeline_mode = #tpu.pipeline_mode<synchronous>, transform_indices = @transform_3, window_bounds = array<i64: 3, 128, 128>}, {transform_indices = @transform_4, window_bounds = array<i64: 2, 18, 128>}, {transform_indices = @transform_5, window_bounds = array<i64: 1, 2, 128>}]} {
    %c0 = arith.constant 0 : index
    %c0_0 = arith.constant 0 : index
    %c0_1 = arith.constant 0 : index
    %0 = vector.load %arg4[%c0, %c0_0, %c0_1] : memref<3x128x128xf32, #tpu.memory_space<vmem>>, vector<1x128x128xf32>
    %1 = vector.shape_cast %0 : vector<1x128x128xf32> to vector<128x128xf32>
    %c1 = arith.constant 1 : index
    %c0_2 = arith.constant 0 : index
    %c0_3 = arith.constant 0 : index
    %2 = vector.load %arg4[%c1, %c0_2, %c0_3] : memref<3x128x128xf32, #tpu.memory_space<vmem>>, vector<1x128x128xf32>
    %3 = vector.shape_cast %2 : vector<1x128x128xf32> to vector<128x128xf32>
    %c2 = arith.constant 2 : index
    %c0_4 = arith.constant 0 : index
    %c0_5 = arith.constant 0 : index
    %4 = vector.load %arg4[%c2, %c0_4, %c0_5] : memref<3x128x128xf32, #tpu.memory_space<vmem>>, vector<1x128x128xf32>
    %5 = vector.shape_cast %4 : vector<1x128x128xf32> to vector<128x128xf32>
    %c0_6 = arith.constant 0 : index
    %c0_7 = arith.constant 0 : index
    %6 = vector.load %arg2[%c0_6, %c0_7] : memref<1x128xf32, #tpu.memory_space<vmem>>, vector<1x128xf32>
    %c0_8 = arith.constant 0 : index
    %c0_9 = arith.constant 0 : index
    %7 = vector.load %arg3[%c0_8, %c0_9] : memref<1x128xf32, #tpu.memory_space<vmem>>, vector<1x128xf32>
    %8 = tpu.iota {dimensions = array<i32: 0>} : vector<18x128xi32>
    %c1_i32 = arith.constant 1 : i32
    %9 = vector.broadcast %c1_i32 : i32 to vector<18x128xi32>
    %10 = arith.cmpi sge, %8, %9 : vector<18x128xi32>
    %c16_i32 = arith.constant 16 : i32
    %11 = vector.broadcast %c16_i32 : i32 to vector<18x128xi32>
    %12 = arith.cmpi sle, %8, %11 : vector<18x128xi32>
    %13 = arith.andi %10, %12 : vector<18x128xi1>
    %cst = arith.constant 0.000000e+00 : f32
    %14 = vector.broadcast %cst : f32 to vector<1x128xf32>
    %cst_10 = arith.constant 0.000000e+00 : f32
    %15 = vector.broadcast %cst_10 : f32 to vector<1x128xf32>
    %cst_11 = arith.constant 0.000000e+00 : f32
    %16 = vector.broadcast %cst_11 : f32 to vector<1x128xf32>
    %c0_12 = arith.constant 0 : index
    %c0_13 = arith.constant 0 : index
    %c0_14 = arith.constant 0 : index
    %17 = vector.load %arg1[%c0_12, %c0_13, %c0_14] : memref<2x18x128xf32, #tpu.memory_space<vmem>>, vector<1x18x128xf32>
    %18 = vector.shape_cast %17 : vector<1x18x128xf32> to vector<18x128xf32>
    %19 = vector.broadcast %6 : vector<1x128xf32> to vector<18x128xf32>
    %20 = arith.mulf %18, %19 : vector<18x128xf32>
    %21 = vector.broadcast %7 : vector<1x128xf32> to vector<18x128xf32>
    %22 = arith.addf %20, %21 : vector<18x128xf32>
    %cst_15 = arith.constant 0.000000e+00 : f32
    %23 = vector.broadcast %cst_15 : f32 to vector<18x128xf32>
    %24 = arith.maximumf %22, %23 : vector<18x128xf32>
    %cst_16 = arith.constant 0.000000e+00 : f32
    %25 = vector.broadcast %cst_16 : f32 to vector<18x128xf32>
    %26 = arith.select %13, %24, %25 : vector<18x128xi1>, vector<18x128xf32>
    %cst_17 = arith.constant 0.000000e+00 : f32
    %27 = vector.broadcast %cst_17 : f32 to vector<16x128xf32>
    %28 = vector.extract_strided_slice %26 {offsets = [0, 0], sizes = [16, 128], strides = [1, 1]} : vector<18x128xf32> to vector<16x128xf32>
    %cst_18 = arith.constant dense<0.000000e+00> : vector<16x128xf32>
    %29 = tpu.matmul %28, %1, %cst_18 {dimension_numbers = #tpu.dot_dimension_numbers<[1], [0], [0], [1], [0, 0, 1, 1], [], []>} : vector<16x128xf32>, vector<128x128xf32>, vector<16x128xf32> -> vector<16x128xf32>
    %30 = arith.addf %27, %29 : vector<16x128xf32>
    %31 = vector.extract_strided_slice %26 {offsets = [1, 0], sizes = [16, 128], strides = [1, 1]} : vector<18x128xf32> to vector<16x128xf32>
    %cst_19 = arith.constant dense<0.000000e+00> : vector<16x128xf32>
    %32 = tpu.matmul %31, %3, %cst_19 {dimension_numbers = #tpu.dot_dimension_numbers<[1], [0], [0], [1], [0, 0, 1, 1], [], []>} : vector<16x128xf32>, vector<128x128xf32>, vector<16x128xf32> -> vector<16x128xf32>
    %33 = arith.addf %30, %32 : vector<16x128xf32>
    %34 = vector.extract_strided_slice %26 {offsets = [2, 0], sizes = [16, 128], strides = [1, 1]} : vector<18x128xf32> to vector<16x128xf32>
    %cst_20 = arith.constant dense<0.000000e+00> : vector<16x128xf32>
    %35 = tpu.matmul %34, %5, %cst_20 {dimension_numbers = #tpu.dot_dimension_numbers<[1], [0], [0], [1], [0, 0, 1, 1], [], []>} : vector<16x128xf32>, vector<128x128xf32>, vector<16x128xf32> -> vector<16x128xf32>
    %36 = arith.addf %33, %35 : vector<16x128xf32>
    %c0_21 = arith.constant 0 : index
    %c1_22 = arith.constant 1 : index
    %c0_23 = arith.constant 0 : index
    %37 = vector.load %arg5[%c0_21, %c1_22, %c0_23] : memref<2x18x128xf32, #tpu.memory_space<vmem>>, vector<1x16x128xf32>
    %38 = vector.shape_cast %37 : vector<1x16x128xf32> to vector<16x128xf32>
    %39 = vector.shape_cast %36 : vector<16x128xf32> to vector<1x16x128xf32>
    tpu.vector_store %arg5[%c0_21, %c1_22, %c0_23], %39 {strides = array<i32>} : memref<2x18x128xf32, #tpu.memory_space<vmem>>, vector<1x16x128xf32>,
    %c0_24 = arith.constant 0 : index
    %c0_25 = arith.constant 0 : index
    %c0_26 = arith.constant 0 : index
    %40 = vector.load %arg5[%c0_24, %c0_25, %c0_26] : memref<2x18x128xf32, #tpu.memory_space<vmem>>, vector<1x1x128xf32>
    %41 = vector.shape_cast %40 : vector<1x1x128xf32> to vector<1x128xf32>
    %42 = vector.shape_cast %14 : vector<1x128xf32> to vector<1x1x128xf32>
    tpu.vector_store %arg5[%c0_24, %c0_25, %c0_26], %42 {strides = array<i32>} : memref<2x18x128xf32, #tpu.memory_space<vmem>>, vector<1x1x128xf32>,
    %c0_27 = arith.constant 0 : index
    %c17 = arith.constant 17 : index
    %c0_28 = arith.constant 0 : index
    %43 = vector.load %arg5[%c0_27, %c17, %c0_28] : memref<2x18x128xf32, #tpu.memory_space<vmem>>, vector<1x1x128xf32>
    %44 = vector.shape_cast %43 : vector<1x1x128xf32> to vector<1x128xf32>
    %45 = vector.shape_cast %14 : vector<1x128xf32> to vector<1x1x128xf32>
    tpu.vector_store %arg5[%c0_27, %c17, %c0_28], %45 {strides = array<i32>} : memref<2x18x128xf32, #tpu.memory_space<vmem>>, vector<1x1x128xf32>,
    %cst_29 = arith.constant dense<0.000000e+00> : vector<128xf32>
    %46 = vector.multi_reduction <add>, %36, %cst_29 [0] : vector<16x128xf32> to vector<128xf32>
    %47 = vector.shape_cast %46 : vector<128xf32> to vector<1x128xf32>
    %48 = arith.addf %15, %47 : vector<1x128xf32>
    %49 = arith.mulf %36, %36 : vector<16x128xf32>
    %cst_30 = arith.constant dense<0.000000e+00> : vector<128xf32>
    %50 = vector.multi_reduction <add>, %49, %cst_30 [0] : vector<16x128xf32> to vector<128xf32>
    %51 = vector.shape_cast %50 : vector<128xf32> to vector<1x128xf32>
    %52 = arith.addf %16, %51 : vector<1x128xf32>
    %c1_31 = arith.constant 1 : index
    %c0_32 = arith.constant 0 : index
    %c0_33 = arith.constant 0 : index
    %53 = vector.load %arg1[%c1_31, %c0_32, %c0_33] : memref<2x18x128xf32, #tpu.memory_space<vmem>>, vector<1x18x128xf32>
    %54 = vector.shape_cast %53 : vector<1x18x128xf32> to vector<18x128xf32>
    %55 = vector.broadcast %6 : vector<1x128xf32> to vector<18x128xf32>
    %56 = arith.mulf %54, %55 : vector<18x128xf32>
    %57 = vector.broadcast %7 : vector<1x128xf32> to vector<18x128xf32>
    %58 = arith.addf %56, %57 : vector<18x128xf32>
    %cst_34 = arith.constant 0.000000e+00 : f32
    %59 = vector.broadcast %cst_34 : f32 to vector<18x128xf32>
    %60 = arith.maximumf %58, %59 : vector<18x128xf32>
    %cst_35 = arith.constant 0.000000e+00 : f32
    %61 = vector.broadcast %cst_35 : f32 to vector<18x128xf32>
    %62 = arith.select %13, %60, %61 : vector<18x128xi1>, vector<18x128xf32>
    %cst_36 = arith.constant 0.000000e+00 : f32
    %63 = vector.broadcast %cst_36 : f32 to vector<16x128xf32>
    %64 = vector.extract_strided_slice %62 {offsets = [0, 0], sizes = [16, 128], strides = [1, 1]} : vector<18x128xf32> to vector<16x128xf32>
    %cst_37 = arith.constant dense<0.000000e+00> : vector<16x128xf32>
    %65 = tpu.matmul %64, %1, %cst_37 {dimension_numbers = #tpu.dot_dimension_numbers<[1], [0], [0], [1], [0, 0, 1, 1], [], []>} : vector<16x128xf32>, vector<128x128xf32>, vector<16x128xf32> -> vector<16x128xf32>
    %66 = arith.addf %63, %65 : vector<16x128xf32>
    %67 = vector.extract_strided_slice %62 {offsets = [1, 0], sizes = [16, 128], strides = [1, 1]} : vector<18x128xf32> to vector<16x128xf32>
    %cst_38 = arith.constant dense<0.000000e+00> : vector<16x128xf32>
    %68 = tpu.matmul %67, %3, %cst_38 {dimension_numbers = #tpu.dot_dimension_numbers<[1], [0], [0], [1], [0, 0, 1, 1], [], []>} : vector<16x128xf32>, vector<128x128xf32>, vector<16x128xf32> -> vector<16x128xf32>
    %69 = arith.addf %66, %68 : vector<16x128xf32>
    %70 = vector.extract_strided_slice %62 {offsets = [2, 0], sizes = [16, 128], strides = [1, 1]} : vector<18x128xf32> to vector<16x128xf32>
    %cst_39 = arith.constant dense<0.000000e+00> : vector<16x128xf32>
    %71 = tpu.matmul %70, %5, %cst_39 {dimension_numbers = #tpu.dot_dimension_numbers<[1], [0], [0], [1], [0, 0, 1, 1], [], []>} : vector<16x128xf32>, vector<128x128xf32>, vector<16x128xf32> -> vector<16x128xf32>
    %72 = arith.addf %69, %71 : vector<16x128xf32>
    %c1_40 = arith.constant 1 : index
    %c1_41 = arith.constant 1 : index
    %c0_42 = arith.constant 0 : index
    %73 = vector.load %arg5[%c1_40, %c1_41, %c0_42] : memref<2x18x128xf32, #tpu.memory_space<vmem>>, vector<1x16x128xf32>
    %74 = vector.shape_cast %73 : vector<1x16x128xf32> to vector<16x128xf32>
    %75 = vector.shape_cast %72 : vector<16x128xf32> to vector<1x16x128xf32>
    tpu.vector_store %arg5[%c1_40, %c1_41, %c0_42], %75 {strides = array<i32>} : memref<2x18x128xf32, #tpu.memory_space<vmem>>, vector<1x16x128xf32>,
    %c1_43 = arith.constant 1 : index
    %c0_44 = arith.constant 0 : index
    %c0_45 = arith.constant 0 : index
    %76 = vector.load %arg5[%c1_43, %c0_44, %c0_45] : memref<2x18x128xf32, #tpu.memory_space<vmem>>, vector<1x1x128xf32>
    %77 = vector.shape_cast %76 : vector<1x1x128xf32> to vector<1x128xf32>
    %78 = vector.shape_cast %14 : vector<1x128xf32> to vector<1x1x128xf32>
    tpu.vector_store %arg5[%c1_43, %c0_44, %c0_45], %78 {strides = array<i32>} : memref<2x18x128xf32, #tpu.memory_space<vmem>>, vector<1x1x128xf32>,
    %c1_46 = arith.constant 1 : index
    %c17_47 = arith.constant 17 : index
    %c0_48 = arith.constant 0 : index
    %79 = vector.load %arg5[%c1_46, %c17_47, %c0_48] : memref<2x18x128xf32, #tpu.memory_space<vmem>>, vector<1x1x128xf32>
    %80 = vector.shape_cast %79 : vector<1x1x128xf32> to vector<1x128xf32>
    %81 = vector.shape_cast %14 : vector<1x128xf32> to vector<1x1x128xf32>
    tpu.vector_store %arg5[%c1_46, %c17_47, %c0_48], %81 {strides = array<i32>} : memref<2x18x128xf32, #tpu.memory_space<vmem>>, vector<1x1x128xf32>,
    %cst_49 = arith.constant dense<0.000000e+00> : vector<128xf32>
    %82 = vector.multi_reduction <add>, %72, %cst_49 [0] : vector<16x128xf32> to vector<128xf32>
    %83 = vector.shape_cast %82 : vector<128xf32> to vector<1x128xf32>
    %84 = arith.addf %48, %83 : vector<1x128xf32>
    %85 = arith.mulf %72, %72 : vector<16x128xf32>
    %cst_50 = arith.constant dense<0.000000e+00> : vector<128xf32>
    %86 = vector.multi_reduction <add>, %85, %cst_50 [0] : vector<16x128xf32> to vector<128xf32>
    %87 = vector.shape_cast %86 : vector<128xf32> to vector<1x128xf32>
    %88 = arith.addf %52, %87 : vector<1x128xf32>
    %c0_51 = arith.constant 0 : index
    %c0_52 = arith.constant 0 : index
    %c0_53 = arith.constant 0 : index
    %89 = vector.load %arg6[%c0_51, %c0_52, %c0_53] : memref<1x2x128xf32, #tpu.memory_space<vmem>>, vector<1x1x128xf32>
    %90 = vector.shape_cast %89 : vector<1x1x128xf32> to vector<1x128xf32>
    %91 = vector.shape_cast %84 : vector<1x128xf32> to vector<1x1x128xf32>
    tpu.vector_store %arg6[%c0_51, %c0_52, %c0_53], %91 {strides = array<i32>} : memref<1x2x128xf32, #tpu.memory_space<vmem>>, vector<1x1x128xf32>,
    %c0_54 = arith.constant 0 : index
    %c1_55 = arith.constant 1 : index
    %c0_56 = arith.constant 0 : index
    %92 = vector.load %arg6[%c0_54, %c1_55, %c0_56] : memref<1x2x128xf32, #tpu.memory_space<vmem>>, vector<1x1x128xf32>
    %93 = vector.shape_cast %92 : vector<1x1x128xf32> to vector<1x128xf32>
    %94 = vector.shape_cast %88 : vector<1x128xf32> to vector<1x1x128xf32>
    tpu.vector_store %arg6[%c0_54, %c1_55, %c0_56], %94 {strides = array<i32>} : memref<1x2x128xf32, #tpu.memory_space<vmem>>, vector<1x1x128xf32>,
    return
  }
  func.func @transform_0(%arg0: i32) -> (i32, i32, i32) {
    %c0_i32 = arith.constant 0 : i32
    %c0_i32_0 = arith.constant 0 : i32
    %c0_i32_1 = arith.constant 0 : i32
    return %arg0, %c0_i32, %c0_i32_0 : i32, i32, i32
  }
  func.func @transform_1(%arg0: i32) -> (i32, i32) {
    %c0_i32 = arith.constant 0 : i32
    %c0_i32_0 = arith.constant 0 : i32
    %c0_i32_1 = arith.constant 0 : i32
    return %c0_i32, %c0_i32_0 : i32, i32
  }
  func.func @transform_2(%arg0: i32) -> (i32, i32) {
    %c0_i32 = arith.constant 0 : i32
    %c0_i32_0 = arith.constant 0 : i32
    %c0_i32_1 = arith.constant 0 : i32
    return %c0_i32, %c0_i32_0 : i32, i32
  }
  func.func @transform_3(%arg0: i32) -> (i32, i32, i32) {
    %c0_i32 = arith.constant 0 : i32
    %c0_i32_0 = arith.constant 0 : i32
    %c0_i32_1 = arith.constant 0 : i32
    %c0_i32_2 = arith.constant 0 : i32
    return %c0_i32, %c0_i32_0, %c0_i32_1 : i32, i32, i32
  }
  func.func @transform_4(%arg0: i32) -> (i32, i32, i32) {
    %c0_i32 = arith.constant 0 : i32
    %c0_i32_0 = arith.constant 0 : i32
    %c0_i32_1 = arith.constant 0 : i32
    return %arg0, %c0_i32, %c0_i32_0 : i32, i32, i32
  }
  func.func @transform_5(%arg0: i32) -> (i32, i32, i32) {
    %c0_i32 = arith.constant 0 : i32
    %c0_i32_0 = arith.constant 0 : i32
    %c0_i32_1 = arith.constant 0 : i32
    return %arg0, %c0_i32, %c0_i32_0 : i32, i32, i32
  }
}

module attributes {stable_mosaic.version = 11 : i64} {
  func.func @_bn_relu_kernel(%arg0: i32, %arg1: memref<2x18x128xf32, #tpu.memory_space<vmem>>, %arg2: memref<1x128xf32, #tpu.memory_space<vmem>>, %arg3: memref<1x128xf32, #tpu.memory_space<vmem>>, %arg4: memref<2x16x128xf32, #tpu.memory_space<vmem>>) attributes {dimension_semantics = [#tpu.dimension_semantics<parallel>], iteration_bounds = array<i64: 1>, scalar_prefetch = 0 : i64, scratch_operands = 0 : i64, tpu.core_type = #tpu.core_type<tc>, window_params = [{transform_indices = @transform_0, window_bounds = array<i64: 2, 18, 128>}, {pipeline_mode = #tpu.pipeline_mode<synchronous>, transform_indices = @transform_1, window_bounds = array<i64: 1, 128>}, {pipeline_mode = #tpu.pipeline_mode<synchronous>, transform_indices = @transform_2, window_bounds = array<i64: 1, 128>}, {transform_indices = @transform_3, window_bounds = array<i64: 2, 16, 128>}]} {
    %c0 = arith.constant 0 : index
    %c0_0 = arith.constant 0 : index
    %c0_1 = arith.constant 0 : index
    %0 = vector.load %arg1[%c0, %c0_0, %c0_1] : memref<2x18x128xf32, #tpu.memory_space<vmem>>, vector<2x18x128xf32>
    %1 = vector.extract_strided_slice %0 {offsets = [0, 1, 0], sizes = [2, 16, 128], strides = [1, 1, 1]} : vector<2x18x128xf32> to vector<2x16x128xf32>
    %c0_2 = arith.constant 0 : index
    %c0_3 = arith.constant 0 : index
    %2 = vector.load %arg2[%c0_2, %c0_3] : memref<1x128xf32, #tpu.memory_space<vmem>>, vector<1x128xf32>
    %3 = vector.shape_cast %2 : vector<1x128xf32> to vector<1x1x128xf32>
    %4 = vector.broadcast %3 : vector<1x1x128xf32> to vector<2x16x128xf32>
    %5 = arith.mulf %1, %4 : vector<2x16x128xf32>
    %c0_4 = arith.constant 0 : index
    %c0_5 = arith.constant 0 : index
    %6 = vector.load %arg3[%c0_4, %c0_5] : memref<1x128xf32, #tpu.memory_space<vmem>>, vector<1x128xf32>
    %7 = vector.shape_cast %6 : vector<1x128xf32> to vector<1x1x128xf32>
    %8 = vector.broadcast %7 : vector<1x1x128xf32> to vector<2x16x128xf32>
    %9 = arith.addf %5, %8 : vector<2x16x128xf32>
    %cst = arith.constant 0.000000e+00 : f32
    %10 = vector.broadcast %cst : f32 to vector<2x16x128xf32>
    %11 = arith.maximumf %9, %10 : vector<2x16x128xf32>
    %c0_6 = arith.constant 0 : index
    %c0_7 = arith.constant 0 : index
    %c0_8 = arith.constant 0 : index
    %12 = vector.load %arg4[%c0_6, %c0_7, %c0_8] : memref<2x16x128xf32, #tpu.memory_space<vmem>>, vector<2x16x128xf32>
    tpu.vector_store %arg4[%c0_6, %c0_7, %c0_8], %11 {strides = array<i32>} : memref<2x16x128xf32, #tpu.memory_space<vmem>>, vector<2x16x128xf32>,
    return
  }
  func.func @transform_0(%arg0: i32) -> (i32, i32, i32) {
    %c0_i32 = arith.constant 0 : i32
    %c0_i32_0 = arith.constant 0 : i32
    %c0_i32_1 = arith.constant 0 : i32
    return %arg0, %c0_i32, %c0_i32_0 : i32, i32, i32
  }
  func.func @transform_1(%arg0: i32) -> (i32, i32) {
    %c0_i32 = arith.constant 0 : i32
    %c0_i32_0 = arith.constant 0 : i32
    %c0_i32_1 = arith.constant 0 : i32
    return %c0_i32, %c0_i32_0 : i32, i32
  }
  func.func @transform_2(%arg0: i32) -> (i32, i32) {
    %c0_i32 = arith.constant 0 : i32
    %c0_i32_0 = arith.constant 0 : i32
    %c0_i32_1 = arith.constant 0 : i32
    return %c0_i32, %c0_i32_0 : i32, i32
  }
  func.func @transform_3(%arg0: i32) -> (i32, i32, i32) {
    %c0_i32 = arith.constant 0 : i32
    %c0_i32_0 = arith.constant 0 : i32
    %c0_i32_1 = arith.constant 0 : i32
    return %arg0, %c0_i32, %c0_i32_0 : i32, i32, i32
  }
}

</mosaic_0001>

<bundles_post_ra>
// kernel: double_conv.3
= control target key start
LH: loop header
LB: loop body
LE: loop exit
PB: predicated region body
PF: predicated region fallthrough
CT: control target
= control target key end

     0   :  { %vm45_vm0 = vcmask 1046528   ;;  %vm51_vm1 = vcmask 523264   ;;  %vm210_vm2 = vcmask 1045504   ;;  %v922_v62 = vmov 0.0   ;;  %s1111_s1 = inlined_call_operand.vmem [shape: f32[3,64,128], index: 1, kind: input, shape index: {}]   ;;  %s1112_s0 = inlined_call_operand.vmem [shape: f32[2,18,64], index: 0, kind: input, shape index: {}]   ;;  %s1113_s2 = inlined_call_operand.vmem [shape: f32[2,18,128], index: 2, kind: output, shape index: {0}]   ;;  %s1114_s3 = inlined_call_operand.vmem [shape: f32[1,2,128], index: 3, kind: output, shape index: {1}]  }
   0x1   :  { %v608_v0 = vld [vmem:[%s1111_s1 + $0x40] sm:$0xff]  ;;  %v609_v1 = vld [vmem:[%s1111_s1 + $0x48] sm:$0xff]  ;;  %v610_v2 = vld [vmem:[%s1111_s1 + $0x50] sm:$0xff]  ;;  %299 = vst [vmem:[%s1113_s2] sm:$0x1] %v922_v62 }
   0x2   :  { %v817_v3 = vpack.c.bf16 %v609_v1, %v608_v0  ;;  %v611_v4 = vld [vmem:[%s1111_s1 + $0x58] sm:$0xff]  ;;  %v612_v6 = vld [vmem:[%s1111_s1 + $0x60] sm:$0xff]  ;;  %v613_v7 = vld [vmem:[%s1111_s1 + $0x68] sm:$0xff]  ;;  %300 = vst [vmem:[%s1113_s2 + $0x11] sm:$0x1] %v922_v62 }
   0x3   :  { %v821_v5 = vpack.c.bf16 %v611_v4, %v610_v2  ;;  %v964_v8 = vld [vmem:[%s1112_s0] sm:$0xff]  ;;  %v969_v9 = vld [vmem:[%s1112_s0 + $0x8] sm:$0xff]  ;;  %v976_v12 = vld [vmem:[%s1112_s0 + $0x18] sm:$0xff]  ;;  %v825_v14 = vpack.c.bf16 %v613_v7, %v612_v6  ;;  %641 = vst [vmem:[%s1113_s2 + $0x18] sm:$0x1] %v922_v62 }
   0x4   :  { %818 = vmatprep.subr.bf16.mxu0 %v817_v3  ;;  %866 = vmatprep.subr.bf16.mxu1 %v817_v3  ;;  %v46_v10 = vrot.slane %v964_v8, 1  ;;  %v47_v11 = vrot.slane %v969_v9, 1  ;;  %v981_v13 = vld [vmem:[%s1112_s0 + $0x20] sm:$0xff]  ;;  %v326_v15 = vrot.slane %v976_v12, 1  ;;  %v614_v17 = vld [vmem:[%s1111_s1 + $0x70] sm:$0xff]  ;;  %v615_v18 = vld [vmem:[%s1111_s1 + $0x78] sm:$0xff] }
   0x5   :  { %820 = vmatpush3.bf16.msra.mxu0 %v817_v3  ;;  %868 = vmatpush3.bf16.msra.mxu1 %v817_v3  ;;  %v327_v16 = vrot.slane %v981_v13, 1  ;;  %v829_v21 = vpack.c.bf16 %v615_v18, %v614_v17  ;;  %v997_v22 = vld [vmem:[%s1112_s0 + $0x10] sm:$0x3]  ;;  %v1002_v23 = vld [vmem:[%s1112_s0 + $0x28] sm:$0x3]  ;;  %v13_v24 = vld [vmem:[%s1111_s1] sm:$0xff] }
   0x6   :  { %822 = vmatprep.subr.bf16.mxu0 %v821_v5  ;;  %870 = vmatprep.subr.bf16.mxu1 %v821_v5  ;;  %v48_v19 = vsel %vm45_vm0, %v46_v10, %v47_v11  ;;  %v14_v25 = vld [vmem:[%s1111_s1 + $0x8] sm:$0xff]  ;;  %v49_v26 = vrot.slane %v997_v22, 1  ;;  %v329_v27 = vrot.slane %v1002_v23, 1  ;;  %v15_v29 = vld [vmem:[%s1111_s1 + $0x10] sm:$0xff]  ;;  %v16_v30 = vld [vmem:[%s1111_s1 + $0x18] sm:$0xff]  ;;  %v211_v45 = vrot.slane %v964_v8, 2 }
   0x7   :  { %719 = vmatprep.mubr.msk.f32.mxu0 %vm51_vm1, %v48_v19  ;;  %v328_v20 = vsel %vm45_vm0, %v326_v15, %v327_v16  ;;  %v833_v28 = vpack.c.bf16 %v14_v25, %v13_v24  ;;  %v837_v33 = vpack.c.bf16 %v16_v30, %v15_v29  ;;  %v17_v34 = vld [vmem:[%s1111_s1 + $0x20] sm:$0xff]  ;;  %v18_v35 = vld [vmem:[%s1111_s1 + $0x28] sm:$0xff]  ;;  %v19_v37 = vld [vmem:[%s1111_s1 + $0x30] sm:$0xff]  ;;  %v212_v46 = vrot.slane %v969_v9, 2  ;;  %642 = vst [vmem:[%s1113_s2 + $0x29] sm:$0x1] %v922_v62 }
   0x8   :  { %776 = vmatprep.mubr.msk.f32.mxu1 %vm51_vm1, %v328_v20  ;;  %v50_v31 = vsel %vm45_vm0, %v47_v11, %v49_v26  ;;  %v330_v32 = vsel %vm45_vm0, %v327_v16, %v329_v27  ;;  %v841_v36 = vpack.c.bf16 %v18_v35, %v17_v34  ;;  %v20_v38 = vld [vmem:[%s1111_s1 + $0x38] sm:$0xff]  ;;  %v616_v40 = vld [vmem:[%s1111_s1 + $0x80] sm:$0xff]  ;;  %v617_v41 = vld [vmem:[%s1111_s1 + $0x88] sm:$0xff]  ;;  %v489_v47 = vrot.slane %v976_v12, 2 }
   0x9   :  { %824 = vmatpush3.bf16.msra.mxu0 %v821_v5  ;;  %872 = vmatpush3.bf16.msra.mxu1 %v821_v5  ;;  %v845_v39 = vpack.c.bf16 %v20_v38, %v19_v37  ;;  %v849_v42 = vpack.c.bf16 %v617_v41, %v616_v40  ;;  %v618_v43 = vld [vmem:[%s1111_s1 + $0x90] sm:$0xff]  ;;  %v619_v44 = vld [vmem:[%s1111_s1 + $0x98] sm:$0xff]  ;;  %v490_v48 = vrot.slane %v981_v13, 2  ;;  %v620_v50 = vld [vmem:[%s1111_s1 + $0xa0] sm:$0xff]  ;;  %v213_v52 = vsel %vm210_vm2, %v211_v45, %v212_v46 }
   0xa   :  { %826 = vmatprep.subr.bf16.mxu0 %v825_v14  ;;  %874 = vmatprep.subr.bf16.mxu1 %v825_v14  ;;  %v853_v49 = vpack.c.bf16 %v619_v44, %v618_v43  ;;  %v621_v51 = vld [vmem:[%s1111_s1 + $0xa8] sm:$0xff]  ;;  %v622_v55 = vld [vmem:[%s1111_s1 + $0xb0] sm:$0xff]  ;;  %v623_v56 = vld [vmem:[%s1111_s1 + $0xb8] sm:$0xff]  ;;  %v214_v58 = vrot.slane %v997_v22, 2  ;;  %v492_v59 = vrot.slane %v1002_v23, 2 }
   0xb   :  { %v491_v53 = vsel %vm210_vm2, %v489_v47, %v490_v48  ;;  %v857_v54 = vpack.c.bf16 %v621_v51, %v620_v50  ;;  %v861_v57 = vpack.c.bf16 %v623_v56, %v622_v55 }
   0xc   :  { %v215_v60 = vsel %vm210_vm2, %v212_v46, %v214_v58  ;;  %v493_v61 = vsel %vm210_vm2, %v490_v48, %v492_v59 }
   0xd   :  { %828 = vmatpush3.bf16.msra.mxu0 %v825_v14  ;;  %876 = vmatpush3.bf16.msra.mxu1 %v825_v14 }
   0xe   :  { %830 = vmatprep.subr.bf16.mxu0 %v829_v21  ;;  %878 = vmatprep.subr.bf16.mxu1 %v829_v21 }
  0x11   :  { %832 = vmatpush3.bf16.msra.mxu0 %v829_v21  ;;  %880 = vmatpush3.bf16.msra.mxu1 %v829_v21 }
  0x12   :  { %834 = vmatprep.subr.bf16.mxu0 %v833_v28  ;;  %882 = vmatprep.subr.bf16.mxu1 %v833_v28 }
  0x14   :  { %720 = vmatmul.mubr.msk.f32.vlgmr.msra.gmra.mrb[0].mxu0 %vm51_vm1, %v50_v31  ;;  %777 = vmatmul.mubr.msk.f32.vlgmr.msra.gmra.mrb[0].mxu1 %vm51_vm1, %v330_v32 }
  0x15   :  { %836 = vmatpush3.bf16.msra.mxu0 %v833_v28  ;;  %884 = vmatpush3.bf16.msra.mxu1 %v833_v28 }
  0x16   :  { %838 = vmatprep.subr.bf16.mxu0 %v837_v33  ;;  %886 = vmatprep.subr.bf16.mxu1 %v837_v33 }
  0x17   :  { %738 = vmatprep.mubr.msk.f32.mxu0 %vm51_vm1, %v964_v8  ;;  %795 = vmatprep.mubr.msk.f32.mxu1 %vm51_vm1, %v976_v12 }
  0x19   :  { %840 = vmatpush3.bf16.msra.mxu0 %v837_v33  ;;  %888 = vmatpush3.bf16.msra.mxu1 %v837_v33 }
  0x1a   :  { %842 = vmatprep.subr.bf16.mxu0 %v841_v36  ;;  %890 = vmatprep.subr.bf16.mxu1 %v841_v36 }
  0x1d   :  { %844 = vmatpush3.bf16.msra.mxu0 %v841_v36  ;;  %892 = vmatpush3.bf16.msra.mxu1 %v841_v36 }
  0x1e   :  { %846 = vmatprep.subr.bf16.mxu0 %v845_v39  ;;  %894 = vmatprep.subr.bf16.mxu1 %v845_v39 }
  0x21   :  { %848 = vmatpush3.bf16.msra.mxu0 %v845_v39  ;;  %896 = vmatpush3.bf16.msra.mxu1 %v845_v39 }
  0x22   :  { %850 = vmatprep.subr.bf16.mxu0 %v849_v42  ;;  %898 = vmatprep.subr.bf16.mxu1 %v849_v42 }
  0x24   :  { %739 = vmatmul.mubr.msk.f32.vlgmr.msra.gmra.mrb[0].mxu0 %vm51_vm1, %v969_v9  ;;  %796 = vmatmul.mubr.msk.f32.vlgmr.msra.gmra.mrb[0].mxu1 %vm51_vm1, %v981_v13 }
  0x25   :  { %852 = vmatpush3.bf16.msra.mxu0 %v849_v42  ;;  %900 = vmatpush3.bf16.msra.mxu1 %v849_v42 }
  0x26   :  { %854 = vmatprep.subr.bf16.mxu0 %v853_v49  ;;  %902 = vmatprep.subr.bf16.mxu1 %v853_v49 }
  0x27   :  { %757 = vmatprep.mubr.msk.f32.mxu0 %vm51_vm1, %v213_v52  ;;  %814 = vmatprep.mubr.msk.f32.mxu1 %vm51_vm1, %v491_v53 }
  0x29   :  { %856 = vmatpush3.bf16.msra.mxu0 %v853_v49  ;;  %904 = vmatpush3.bf16.msra.mxu1 %v853_v49 }
  0x2a   :  { %858 = vmatprep.subr.bf16.mxu0 %v857_v54  ;;  %906 = vmatprep.subr.bf16.mxu1 %v857_v54 }
  0x2d   :  { %860 = vmatpush3.bf16.msra.mxu0 %v857_v54  ;;  %908 = vmatpush3.bf16.msra.mxu1 %v857_v54 }
  0x2e   :  { %862 = vmatprep.subr.bf16.mxu0 %v861_v57  ;;  %910 = vmatprep.subr.bf16.mxu1 %v861_v57 }
  0x31   :  { %864 = vmatpush3.bf16.msra.mxu0 %v861_v57  ;;  %912 = vmatpush3.bf16.msra.mxu1 %v861_v57 }
  0x34   :  { %758 = vmatmul.mubr.msk.f32.vlgmr.msra.gmra.mrb[0].mxu0 %vm51_vm1, %v215_v60  ;;  %815 = vmatmul.mubr.msk.f32.vlgmr.msra.gmra.mrb[0].mxu1 %vm51_vm1, %v493_v61 }
 0x107   :  { %v759_v63 = vpop.f32.mrb[0].mxu0  ;;  %v816_v0 = vpop.f32.mrb[0].mxu1 }
 0x108   :  { %298 = vst [vmem:[%s1113_s2 + $0x9] sm:$0xff] %v759_v63  ;;  %v310_v1 = vmul.f32 %v759_v63, %v759_v63  ;;  %640 = vst [vmem:[%s1113_s2 + $0x21] sm:$0xff] %v816_v0  ;;  %v589_v2 = vmul.f32 %v816_v0, %v816_v0  ;;  %v286_v3 = vpop.f32.mrb[1].mxu0  ;;  %v564_v4 = vpop.f32.mrb[1].mxu1 }
 0x109   :  { %297 = vst [vmem:[%s1113_s2 + $0x1] sm:$0xff] %v286_v3  ;;  %v301_v5 = vadd.f32 %v759_v63, %v286_v3  ;;  %v309_v6 = vmul.f32 %v286_v3, %v286_v3  ;;  %639 = vst [vmem:[%s1113_s2 + $0x19] sm:$0xff] %v564_v4  ;;  %v580_v7 = vadd.f32 %v816_v0, %v564_v4 }
 0x10a   :  { %v588_v8 = vmul.f32 %v564_v4, %v564_v4 }
 0x10b   :  { %v302_v9 = vrot.slane %v301_v5, 4  ;;  %v311_v10 = vadd.f32 %v310_v1, %v309_v6  ;;  %v581_v11 = vrot.slane %v580_v7, 4 }
 0x10c   :  { %v590_v12 = vadd.f32 %v589_v2, %v588_v8 }
 0x10d   :  { %v303_v13 = vadd.f32 %v302_v9, %v301_v5  ;;  %v312_v14 = vrot.slane %v311_v10, 4  ;;  %v582_v15 = vadd.f32 %v581_v11, %v580_v7 }
 0x10e   :  { %v591_v16 = vrot.slane %v590_v12, 4 }
 0x10f   :  { %v304_v17 = vrot.slane %v303_v13, 2  ;;  %v313_v18 = vadd.f32 %v312_v14, %v311_v10  ;;  %v583_v19 = vrot.slane %v582_v15, 2 }
 0x110   :  { %v592_v20 = vadd.f32 %v591_v16, %v590_v12 }
 0x111   :  { %v305_v21 = vadd.f32 %v304_v17, %v303_v13  ;;  %v314_v22 = vrot.slane %v313_v18, 2  ;;  %v584_v23 = vadd.f32 %v583_v19, %v582_v15 }
 0x112   :  { %v593_v24 = vrot.slane %v592_v20, 2 }
 0x113   :  { %v306_v25 = vrot.slane %v305_v21, 1  ;;  %v315_v26 = vadd.f32 %v314_v22, %v313_v18  ;;  %v585_v27 = vrot.slane %v584_v23, 1 }
 0x114   :  { %v594_v28 = vadd.f32 %v593_v24, %v592_v20 }
 0x115   :  { %v307_v29 = vadd.f32 %v306_v25, %v305_v21  ;;  %v316_v30 = vrot.slane %v315_v26, 1  ;;  %v586_v31 = vadd.f32 %v585_v27, %v584_v23 }
 0x116   :  { %v595_v32 = vrot.slane %v594_v28, 1 }
 0x117   :  { %v317_v33 = vadd.f32 %v316_v30, %v315_v26  ;;  %v587_v34 = vadd.f32 %v586_v31, %v307_v29 }
 0x118   :  { %v596_v35 = vadd.f32 %v595_v32, %v594_v28 }
 0x119   :  { %598 = vst [vmem:[%s1114_s3] sm:$0x1] %v587_v34 }
 0x11a   :  { %v597_v36 = vadd.f32 %v596_v35, %v317_v33 }
 0x11c   :  { %599 = vst [vmem:[%s1114_s3 + $0x1] sm:$0x1] %v597_v36 }

// kernel: tile.28
= control target key start
LH: loop header
LB: loop body
LE: loop exit
PB: predicated region body
PF: predicated region fallthrough
CT: control target
= control target key end

     0   :  { %s28_s0 = inlined_call_operand.vmem [shape: f32[8], index: 0, kind: input, shape index: {}]   ;;  %s29_s1 = inlined_call_operand.vmem [shape: f32[16,8], index: 1, kind: output, shape index: {}]  }
   0x1   :  { %v4_v0 = vld [vmem:[%s28_s0] ss:$0 sm:$0xff] }
   0x2   :  { %5 = vst [vmem:[%s29_s1] sm:$0xff] %v4_v0  ;;  %8 = vst [vmem:[%s29_s1 + $0x8] sm:$0xff] %v4_v0 }

// kernel: tile.29
= control target key start
LH: loop header
LB: loop body
LE: loop exit
PB: predicated region body
PF: predicated region fallthrough
CT: control target
= control target key end

     0   :  { %s131_s10 = smov 120   ;;  %s132_s11 = smov 104   ;;  %vm3_vm0 = vcmask 64512   ;;  %vm9_vm1 = vcmask 1048512   ;;  %vm15_vm2 = vcmask 982912   ;;  %vm21_vm3 = vcmask 917312   ;;  %s207_s0 = inlined_call_operand.vmem [shape: f32[16,8], index: 0, kind: input, shape index: {}]   ;;  %s208_s1 = inlined_call_operand.vmem [shape: f32[1,128], index: 1, kind: output, shape index: {}]  }
   0x1   :  { %v101_v0 = vld [vmem:[%s207_s0 + $0xf] sm:$0x1]   ;;  %v103_v1 = vld [vmem:[%s207_s0 + $0xd] sm:$0x1]   ;;  %v102_v2 = vld [vmem:[%s207_s0 + $0xe] sm:$0x1]  }
   0x2   :  { %7 = vrot.lane.b32.xlu0 %v101_v0, %s131_s10  ;;  %19 = vrot.lane.b32.xlu1 %v103_v1, %s132_s11  ;;  %v104_v3 = vld [vmem:[%s207_s0 + $0xc] sm:$0x1]   ;;  %s133_s16 = smov 112   ;;  %s134_s17 = smov 96   ;;  %v105_v4 = vld [vmem:[%s207_s0 + $0xb] sm:$0x1]  }
   0x3   :  { %v106_v5 = vld [vmem:[%s207_s0 + $0xa] sm:$0x1]   ;;  %v2_v6 = vld [vmem:[%s207_s0] sm:$0x1]   ;;  %s135_s24 = smov 88   ;;  %s136_s25 = smov 80  }
   0x4   :  { %4 = vst.msk [vmem:[#allocation0] sm:$0x1] %vm3_vm0, %v2_v6   ;;  %v107_v7 = vld [vmem:[%s207_s0 + $0x9] sm:$0x1]   ;;  %v108_v8 = vld [vmem:[%s207_s0 + $0x8] sm:$0x1]  }
   0x5   :  { %s137_s30 = smov 72   ;;  %s138_s2 = smov 64   ;;  %v109_v9 = vld [vmem:[%s207_s0 + $0x7] sm:$0x1]   ;;  %v110_v10 = vld [vmem:[%s207_s0 + $0x6] sm:$0x1]  }
   0x6   :  { %13 = vrot.lane.b32.xlu0 %v102_v2, %s133_s16  ;;  %25 = vrot.lane.b32.xlu1 %v104_v3, %s134_s17  ;;  %s139_s7 = smov 56   ;;  %s140_s8 = smov 48   ;;  %v111_v11 = vld [vmem:[%s207_s0 + $0x5] sm:$0x1]   ;;  %v112_v12 = vld [vmem:[%s207_s0 + $0x4] sm:$0x1]  }
   0x7   :  { %s141_s13 = smov 40   ;;  %s142_s14 = smov 32   ;;  %v113_v13 = vld [vmem:[%s207_s0 + $0x3] sm:$0x1]   ;;  %v114_v14 = vld [vmem:[%s207_s0 + $0x2] sm:$0x1]  }
   0x8   :  { %s143_s19 = smov 24   ;;  %s144_s20 = smov 16   ;;  %v115_v15 = vld [vmem:[%s207_s0 + $0x1] sm:$0x1]   ;;  %vm27_vm4 = vcmask 851712   ;;  %vm33_vm5 = vcmask 786112  }
   0x9   :  { %s145_s0 = smov 8   ;;  %vm39_vm6 = vcmask 720512   ;;  %vm45_vm7 = vcmask 654912   ;;  %vm51_vm8 = vcmask 589312   ;;  %vm57_vm9 = vcmask 523712  }
   0xa   :  { %31 = vrot.lane.b32.xlu0 %v105_v4, %s135_s24  ;;  %37 = vrot.lane.b32.xlu1 %v106_v5, %s136_s25  ;;  %vm63_vm10 = vcmask 458112   ;;  %vm69_vm11 = vcmask 392512   ;;  %vm75_vm12 = vcmask 326912   ;;  %vm81_vm13 = vcmask 261312  }
   0xb   :  { %vm87_vm14 = vcmask 195712   ;;  %vm93_vm15 = vcmask 130112  }
   0xe   :  { %43 = vrot.lane.b32.xlu0 %v107_v7, %s137_s30  ;;  %49 = vrot.lane.b32.xlu1 %v108_v8, %s138_s2 }
  0x12   :  { %55 = vrot.lane.b32.xlu0 %v109_v9, %s139_s7  ;;  %61 = vrot.lane.b32.xlu1 %v110_v10, %s140_s8 }
  0x16   :  { %67 = vrot.lane.b32.xlu0 %v111_v11, %s141_s13  ;;  %73 = vrot.lane.b32.xlu1 %v112_v12, %s142_s14 }
  0x1a   :  { %79 = vrot.lane.b32.xlu0 %v113_v13, %s143_s19  ;;  %85 = vrot.lane.b32.xlu1 %v114_v14, %s144_s20 }
  0x1e   :  { %91 = vrot.lane.b32.xlu0 %v115_v15, %s145_s0 }
  0x74   :  { %v8_v16 = vpop.permute.xlu0 %7   ;;  %v20_v17 = vpop.permute.xlu1 %19  }
  0x75   :  { %10 = vst.msk [vmem:[#allocation0] sm:$0x1] %vm9_vm1, %v8_v16  }
  0x78   :  { %v14_v18 = vpop.permute.xlu0 %13   ;;  %v26_v19 = vpop.permute.xlu1 %25  }
  0x79   :  { %16 = vst.msk [vmem:[#allocation0] sm:$0x1] %vm15_vm2, %v14_v18  }
  0x7a   :  { %22 = vst.msk [vmem:[#allocation0] sm:$0x1] %vm21_vm3, %v20_v17  }
  0x7b   :  { %28 = vst.msk [vmem:[#allocation0] sm:$0x1] %vm27_vm4, %v26_v19  }
  0x7c   :  { %v32_v20 = vpop.permute.xlu0 %31   ;;  %v38_v21 = vpop.permute.xlu1 %37  }
  0x7d   :  { %34 = vst.msk [vmem:[#allocation0] sm:$0x1] %vm33_vm5, %v32_v20  }
  0x7e   :  { %40 = vst.msk [vmem:[#allocation0] sm:$0x1] %vm39_vm6, %v38_v21  }
  0x80   :  { %v44_v22 = vpop.permute.xlu0 %43   ;;  %v50_v23 = vpop.permute.xlu1 %49  }
  0x81   :  { %46 = vst.msk [vmem:[#allocation0] sm:$0x1] %vm45_vm7, %v44_v22  }
  0x82   :  { %52 = vst.msk [vmem:[#allocation0] sm:$0x1] %vm51_vm8, %v50_v23  }
  0x84   :  { %v56_v24 = vpop.permute.xlu0 %55   ;;  %v62_v25 = vpop.permute.xlu1 %61  }
  0x85   :  { %58 = vst.msk [vmem:[#allocation0] sm:$0x1] %vm57_vm9, %v56_v24  }
  0x86   :  { %64 = vst.msk [vmem:[#allocation0] sm:$0x1] %vm63_vm10, %v62_v25  }
  0x88   :  { %v68_v26 = vpop.permute.xlu0 %67   ;;  %v74_v27 = vpop.permute.xlu1 %73  }
  0x89   :  { %70 = vst.msk [vmem:[#allocation0] sm:$0x1] %vm69_vm11, %v68_v26  }
  0x8a   :  { %76 = vst.msk [vmem:[#allocation0] sm:$0x1] %vm75_vm12, %v74_v27  }
  0x8c   :  { %v80_v28 = vpop.permute.xlu0 %79   ;;  %v86_v29 = vpop.permute.xlu1 %85  }
  0x8d   :  { %82 = vst.msk [vmem:[#allocation0] sm:$0x1] %vm81_vm13, %v80_v28  }
  0x8e   :  { %88 = vst.msk [vmem:[#allocation0] sm:$0x1] %vm87_vm14, %v86_v29  }
  0x90   :  { %v92_v30 = vpop.permute.xlu0 %91  }
  0x91   :  { %94 = vst.msk [vmem:[#allocation0] sm:$0x1] %vm93_vm15, %v92_v30  }
  0x98   :  { %v98_v31 = vld [vmem:[#allocation0] sm:$0x1] }
  0x99   :  { %100 = vst [vmem:[%s208_s1] sm:$0x1] %v98_v31 }

// kernel: double_conv.4
= control target key start
LH: loop header
LB: loop body
LE: loop exit
PB: predicated region body
PF: predicated region fallthrough
CT: control target
= control target key end

     0   :  { %v71_v8 = vlaneseq  ;;  %vm114_vm1 = vcmask 1046528   ;;  %vm272_vm3 = vcmask 1045504   ;;  %s1531_s3 = inlined_call_operand.vmem [shape: f32[3,128,128], index: 3, kind: input, shape index: {}]   ;;  %s1532_s1 = inlined_call_operand.vmem [shape: f32[1,128], index: 1, kind: input, shape index: {}]   ;;  %s1533_s0 = inlined_call_operand.vmem [shape: f32[2,18,128], index: 0, kind: input, shape index: {}]   ;;  %s1534_s2 = inlined_call_operand.vmem [shape: f32[1,128], index: 2, kind: input, shape index: {}]   ;;  %s1535_s4 = inlined_call_operand.vmem [shape: f32[2,18,128], index: 4, kind: output, shape index: {0}]   ;;  %s1536_s5 = inlined_call_operand.vmem [shape: f32[1,2,128], index: 5, kind: output, shape index: {1}]  }
   0x1   :  { %v672_v0 = vld [vmem:[%s1531_s3 + $0x80] sm:$0xff]  ;;  %v673_v1 = vld [vmem:[%s1531_s3 + $0x88] sm:$0xff]  ;;  %v674_v2 = vld [vmem:[%s1531_s3 + $0x90] sm:$0xff] }
   0x2   :  { %v1033_v3 = vpack.c.bf16 %v673_v1, %v672_v0  ;;  %v675_v4 = vld [vmem:[%s1531_s3 + $0x98] sm:$0xff]  ;;  %v676_v6 = vld [vmem:[%s1531_s3 + $0xa0] sm:$0xff]  ;;  %v677_v7 = vld [vmem:[%s1531_s3 + $0xa8] sm:$0xff]  ;;  %v1295_v14 = vshrl.u32 %v71_v8, 7 }
   0x3   :  { %v1037_v5 = vpack.c.bf16 %v675_v4, %v674_v2  ;;  %v1041_v9 = vpack.c.bf16 %v677_v7, %v676_v6  ;;  %v678_v10 = vld [vmem:[%s1531_s3 + $0xb0] sm:$0xff]  ;;  %v679_v11 = vld [vmem:[%s1531_s3 + $0xb8] sm:$0xff]  ;;  %v704_v12 = vld [vmem:[%s1532_s1] ss:$0 sm:$0xff] }
   0x4   :  { %1034 = vmatprep.subr.bf16.mxu0 %v1033_v3  ;;  %1130 = vmatprep.subr.bf16.mxu1 %v1033_v3  ;;  %v705_v13 = vld [vmem:[%s1534_s2] ss:$0 sm:$0xff]  ;;  %v85_v16 = vld [vmem:[%s1533_s0 + $0x8] sm:$0xff]  ;;  %v707_v19 = vld [vmem:[%s1533_s0 + $0x18] sm:$0xff]  ;;  %v1045_v23 = vpack.c.bf16 %v679_v11, %v678_v10  ;;  %vm75_vm0 = vcmp.ge.s32.totalorder %v1295_v14, 1  ;;  %v74_v54 = vadd.s32 16, %v1295_v14 }
   0x5   :  { %1036 = vmatpush3.bf16.msra.mxu0 %v1033_v3  ;;  %1132 = vmatpush3.bf16.msra.mxu1 %v1033_v3  ;;  %v84_v15 = vld [vmem:[%s1533_s0] sm:$0xff]  ;;  %v94_v18 = vmul.f32 %v704_v12, %v85_v16  ;;  %v383_v21 = vmul.f32 %v707_v19, %v704_v12  ;;  %v681_v25 = vld [vmem:[%s1531_s3 + $0xc8] sm:$0xff]  ;;  %v86_v30 = vld [vmem:[%s1533_s0 + $0x10] sm:$0x3] }
   0x6   :  { %1038 = vmatprep.subr.bf16.mxu0 %v1037_v5  ;;  %1134 = vmatprep.subr.bf16.mxu1 %v1037_v5  ;;  %v93_v17 = vmul.f32 %v704_v12, %v84_v15  ;;  %v708_v20 = vld [vmem:[%s1533_s0 + $0x20] sm:$0xff]  ;;  %v709_v31 = vld [vmem:[%s1533_s0 + $0x28] sm:$0x3]  ;;  %v682_v37 = vld [vmem:[%s1531_s3 + $0xd0] sm:$0xff]  ;;  %v95_v41 = vmul.f32 %v704_v12, %v86_v30  ;;  %vm80_vm2 = vcmp.le.s32.totalorder %v74_v54, 16 }
   0x7   :  { %v384_v22 = vmul.f32 %v708_v20, %v704_v12  ;;  %v680_v24 = vld [vmem:[%s1531_s3 + $0xc0] sm:$0xff]  ;;  %v103_v27 = vadd.f32 %v705_v13, %v94_v18  ;;  %v1318_v28 = vadd.f32 %v705_v13, %v383_v21  ;;  %v683_v38 = vld [vmem:[%s1531_s3 + $0xd8] sm:$0xff]  ;;  %v385_v42 = vmul.f32 %v709_v31, %v704_v12  ;;  %v685_v53 = vld [vmem:[%s1531_s3 + $0xe8] sm:$0xff] }
   0x8   :  { %v1315_v26 = vadd.f32 %v705_v13, %v93_v17  ;;  %v1049_v34 = vpack.c.bf16 %v681_v25, %v680_v24  ;;  %v1053_v47 = vpack.c.bf16 %v683_v38, %v682_v37  ;;  %v104_v50 = vadd.f32 %v705_v13, %v95_v41  ;;  %v684_v52 = vld [vmem:[%s1531_s3 + $0xe0] sm:$0xff]  ;;  %v686_v58 = vld [vmem:[%s1531_s3 + $0xf0] sm:$0xff]  ;;  %v687_v59 = vld [vmem:[%s1531_s3 + $0xf8] sm:$0xff] }
   0x9   :  { %1040 = vmatpush3.bf16.msra.mxu0 %v1037_v5  ;;  %1136 = vmatpush3.bf16.msra.mxu1 %v1037_v5  ;;  %v387_v29 = vadd.f32 %v705_v13, %v384_v22  ;;  %v1327_v33 = vmax.f32 %v103_v27, 0.0  ;;  %v389_v35 = vmax.f32 %v1318_v28, 0.0  ;;  %v388_v51 = vadd.f32 %v705_v13, %v385_v42  ;;  %v19_v63 = vld [vmem:[%s1531_s3] sm:$0xff]  ;;  %v20_v0 = vld [vmem:[%s1531_s3 + $0x8] sm:$0xff]  ;;  %v21_v4 = vld [vmem:[%s1531_s3 + $0x10] sm:$0xff] }
   0xa   :  { %1042 = vmatprep.subr.bf16.mxu0 %v1041_v9  ;;  %1138 = vmatprep.subr.bf16.mxu1 %v1041_v9  ;;  %v105_v32 = vmax.f32 %v1315_v26, 0.0  ;;  %v1057_v55 = vpack.c.bf16 %v685_v53, %v684_v52  ;;  %v107_v56 = vmax.f32 %v104_v50, 0.0  ;;  %v1061_v60 = vpack.c.bf16 %v687_v59, %v686_v58  ;;  %v22_v5 = vld [vmem:[%s1531_s3 + $0x18] sm:$0xff]  ;;  %v24_v10 = vld [vmem:[%s1531_s3 + $0x28] sm:$0xff]  ;;  %v25_v12 = vld [vmem:[%s1531_s3 + $0x30] sm:$0xff] }
   0xb   :  { %v1330_v36 = vmax.f32 %v387_v29, 0.0  ;;  %v116_v40 = vrot.slane %v1327_v33, 1  ;;  %v1350_v44 = vsel %vm75_vm0, %v389_v35, 0.0  ;;  %v391_v57 = vmax.f32 %v388_v51, 0.0  ;;  %v26_v13 = vld [vmem:[%s1531_s3 + $0x38] sm:$0xff]  ;;  %v27_v16 = vld [vmem:[%s1531_s3 + $0x40] sm:$0xff] }
   0xc   :  { %v1342_v39 = vsel %vm75_vm0, %v105_v32, 0.0  ;;  %v398_v46 = vrot.slane %v1350_v44, 1  ;;  %v1369_v61 = vsel %vm80_vm2, %v107_v56, 0.0  ;;  %v1065_v3 = vpack.c.bf16 %v20_v0, %v19_v63  ;;  %v28_v17 = vld [vmem:[%s1531_s3 + $0x48] sm:$0xff]  ;;  %v29_v14 = vld [vmem:[%s1531_s3 + $0x50] sm:$0xff]  ;;  %v30_v19 = vld [vmem:[%s1531_s3 + $0x58] sm:$0xff] }
   0xd   :  { %1044 = vmatpush3.bf16.msra.mxu0 %v1041_v9  ;;  %1140 = vmatpush3.bf16.msra.mxu1 %v1041_v9  ;;  %v115_v43 = vrot.slane %v1342_v39, 1  ;;  %v399_v45 = vrot.slane %v1330_v36, 1  ;;  %v1371_v62 = vsel %vm80_vm2, %v391_v57, 0.0  ;;  %v118_v1 = vrot.slane %v1369_v61, 1  ;;  %v23_v9 = vld [vmem:[%s1531_s3 + $0x20] sm:$0xff]  ;;  %v32_v22 = vld [vmem:[%s1531_s3 + $0x68] sm:$0xff] }
   0xe   :  { %1046 = vmatprep.subr.bf16.mxu0 %v1045_v23  ;;  %1142 = vmatprep.subr.bf16.mxu1 %v1045_v23  ;;  %v401_v2 = vrot.slane %v1371_v62, 1  ;;  %v1069_v8 = vpack.c.bf16 %v22_v5, %v21_v4  ;;  %v1073_v11 = vpack.c.bf16 %v24_v10, %v23_v9  ;;  %v1077_v15 = vpack.c.bf16 %v26_v13, %v25_v12  ;;  %v31_v21 = vld [vmem:[%s1531_s3 + $0x60] sm:$0xff]  ;;  %v33_v24 = vld [vmem:[%s1531_s3 + $0x70] sm:$0xff]  ;;  %v34_v25 = vld [vmem:[%s1531_s3 + $0x78] sm:$0xff] }
   0xf   :  { %v117_v48 = vsel %vm114_vm1, %v115_v43, %v116_v40  ;;  %v400_v49 = vsel %vm114_vm1, %v398_v46, %v399_v45  ;;  %v119_v6 = vsel %vm114_vm1, %v116_v40, %v118_v1  ;;  %v1081_v18 = vpack.c.bf16 %v28_v17, %v27_v16  ;;  %v688_v27 = vld [vmem:[%s1531_s3 + $0x100] sm:$0xff]  ;;  %v689_v28 = vld [vmem:[%s1531_s3 + $0x108] sm:$0xff]  ;;  %v690_v30 = vld [vmem:[%s1531_s3 + $0x110] sm:$0xff] }
  0x10   :  { %855 = vmatprep.mubr.f32.mxu0 %v117_v48  ;;  %960 = vmatprep.mubr.f32.mxu1 %v400_v49  ;;  %v402_v7 = vsel %vm114_vm1, %v399_v45, %v401_v2  ;;  %v1085_v20 = vpack.c.bf16 %v30_v19, %v29_v14  ;;  %v1093_v26 = vpack.c.bf16 %v34_v25, %v33_v24  ;;  %v691_v31 = vld [vmem:[%s1531_s3 + $0x118] sm:$0xff]  ;;  %v556_v37 = vrot.slane %v1330_v36, 2  ;;  %v692_v40 = vld [vmem:[%s1531_s3 + $0x120] sm:$0xff]  ;;  %v697_v48 = vld [vmem:[%s1531_s3 + $0x148] sm:$0xff] }
  0x11   :  { %1048 = vmatpush3.bf16.msra.mxu0 %v1045_v23  ;;  %1144 = vmatpush3.bf16.msra.mxu1 %v1045_v23  ;;  %v1089_v23 = vpack.c.bf16 %v32_v22, %v31_v21  ;;  %v1097_v29 = vpack.c.bf16 %v689_v28, %v688_v27  ;;  %v1101_v38 = vpack.c.bf16 %v691_v31, %v690_v30  ;;  %v695_v45 = vld [vmem:[%s1531_s3 + $0x138] sm:$0xff]  ;;  %v698_v50 = vld [vmem:[%s1531_s3 + $0x150] sm:$0xff]  ;;  %v700_v53 = vld [vmem:[%s1531_s3 + $0x160] sm:$0xff]  ;;  %v276_v59 = vrot.slane %v1369_v61, 2 }
  0x12   :  { %1050 = vmatprep.subr.bf16.mxu0 %v1049_v34  ;;  %1146 = vmatprep.subr.bf16.mxu1 %v1049_v34  ;;  %v699_v51 = vld [vmem:[%s1531_s3 + $0x158] sm:$0xff]  ;;  %v701_v54 = vld [vmem:[%s1531_s3 + $0x168] sm:$0xff]  ;;  %v702_v56 = vld [vmem:[%s1531_s3 + $0x170] sm:$0xff]  ;;  %v1234_v1 = vmov 0.0  }
  0x13   :  { %v1117_v52 = vpack.c.bf16 %v699_v51, %v698_v50  ;;  %v703_v57 = vld [vmem:[%s1531_s3 + $0x178] sm:$0xff]  ;;  %359 = vst [vmem:[%s1535_s4] sm:$0x1] %v1234_v1  ;;  %360 = vst [vmem:[%s1535_s4 + $0x11] sm:$0x1] %v1234_v1 }
  0x14   :  { %v1125_v58 = vpack.c.bf16 %v703_v57, %v702_v56  ;;  %713 = vst [vmem:[%s1535_s4 + $0x18] sm:$0x1] %v1234_v1  ;;  %714 = vst [vmem:[%s1535_s4 + $0x29] sm:$0x1] %v1234_v1 }
  0x15   :  { %1052 = vmatpush3.bf16.msra.mxu0 %v1049_v34  ;;  %1148 = vmatpush3.bf16.msra.mxu1 %v1049_v34  ;;  %v274_v34 = vrot.slane %v1327_v33, 2 }
  0x16   :  { %1054 = vmatprep.subr.bf16.mxu0 %v1053_v47  ;;  %1150 = vmatprep.subr.bf16.mxu1 %v1053_v47 }
  0x17   :  { %v277_v63 = vsel %vm272_vm3, %v274_v34, %v276_v59 }
  0x19   :  { %1056 = vmatpush3.bf16.msra.mxu0 %v1053_v47  ;;  %1152 = vmatpush3.bf16.msra.mxu1 %v1053_v47  ;;  %v696_v47 = vld [vmem:[%s1531_s3 + $0x140] sm:$0xff] }
  0x1a   :  { %1058 = vmatprep.subr.bf16.mxu0 %v1057_v55  ;;  %1154 = vmatprep.subr.bf16.mxu1 %v1057_v55  ;;  %v1113_v49 = vpack.c.bf16 %v697_v48, %v696_v47 }
  0x1d   :  { %1060 = vmatpush3.bf16.msra.mxu0 %v1057_v55  ;;  %1156 = vmatpush3.bf16.msra.mxu1 %v1057_v55  ;;  %v1121_v55 = vpack.c.bf16 %v701_v54, %v700_v53 }
  0x1e   :  { %1062 = vmatprep.subr.bf16.mxu0 %v1061_v60  ;;  %1158 = vmatprep.subr.bf16.mxu1 %v1061_v60 }
  0x21   :  { %1064 = vmatpush3.bf16.msra.mxu0 %v1061_v60  ;;  %1160 = vmatpush3.bf16.msra.mxu1 %v1061_v60  ;;  %v558_v60 = vrot.slane %v1371_v62, 2 }
  0x22   :  { %1066 = vmatprep.subr.bf16.mxu0 %v1065_v3  ;;  %1162 = vmatprep.subr.bf16.mxu1 %v1065_v3 }
  0x23   :  { %v559_v0 = vsel %vm272_vm3, %v556_v37, %v558_v60 }
  0x24   :  { %856 = vmatmul.mubr.f32.vlgmr.msra.gmra.mrb[0].mxu0 %v119_v6  ;;  %961 = vmatmul.mubr.f32.vlgmr.msra.gmra.mrb[0].mxu1 %v402_v7 }
  0x25   :  { %1068 = vmatpush3.bf16.msra.mxu0 %v1065_v3  ;;  %1164 = vmatpush3.bf16.msra.mxu1 %v1065_v3 }
  0x26   :  { %1070 = vmatprep.subr.bf16.mxu0 %v1069_v8  ;;  %1166 = vmatprep.subr.bf16.mxu1 %v1069_v8 }
  0x27   :  { %890 = vmatprep.mubr.msk.f32.mxu0 %vm75_vm0, %v105_v32  ;;  %995 = vmatprep.mubr.msk.f32.mxu1 %vm75_vm0, %v389_v35  ;;  %v273_v32 = vrot.slane %v1342_v39, 2  ;;  %v555_v35 = vrot.slane %v1350_v44, 2  ;;  %v693_v39 = vld [vmem:[%s1531_s3 + $0x128] sm:$0xff]  ;;  %v694_v44 = vld [vmem:[%s1531_s3 + $0x130] sm:$0xff] }
  0x28   :  { %v1105_v43 = vpack.c.bf16 %v693_v39, %v692_v40  ;;  %v1109_v46 = vpack.c.bf16 %v695_v45, %v694_v44 }
  0x29   :  { %1072 = vmatpush3.bf16.msra.mxu0 %v1069_v8  ;;  %1168 = vmatpush3.bf16.msra.mxu1 %v1069_v8  ;;  %v275_v41 = vsel %vm272_vm3, %v273_v32, %v274_v34  ;;  %v557_v42 = vsel %vm272_vm3, %v555_v35, %v556_v37 }
  0x2a   :  { %1074 = vmatprep.subr.bf16.mxu0 %v1073_v11  ;;  %1170 = vmatprep.subr.bf16.mxu1 %v1073_v11 }
  0x2d   :  { %1076 = vmatpush3.bf16.msra.mxu0 %v1073_v11  ;;  %1172 = vmatpush3.bf16.msra.mxu1 %v1073_v11 }
  0x2e   :  { %1078 = vmatprep.subr.bf16.mxu0 %v1077_v15  ;;  %1174 = vmatprep.subr.bf16.mxu1 %v1077_v15 }
  0x31   :  { %1080 = vmatpush3.bf16.msra.mxu0 %v1077_v15  ;;  %1176 = vmatpush3.bf16.msra.mxu1 %v1077_v15 }
  0x32   :  { %1082 = vmatprep.subr.bf16.mxu0 %v1081_v18  ;;  %1178 = vmatprep.subr.bf16.mxu1 %v1081_v18 }
  0x35   :  { %1084 = vmatpush3.bf16.msra.mxu0 %v1081_v18  ;;  %1180 = vmatpush3.bf16.msra.mxu1 %v1081_v18 }
  0x36   :  { %1086 = vmatprep.subr.bf16.mxu0 %v1085_v20  ;;  %1182 = vmatprep.subr.bf16.mxu1 %v1085_v20 }
  0x39   :  { %1088 = vmatpush3.bf16.msra.mxu0 %v1085_v20  ;;  %1184 = vmatpush3.bf16.msra.mxu1 %v1085_v20 }
  0x3a   :  { %1090 = vmatprep.subr.bf16.mxu0 %v1089_v23  ;;  %1186 = vmatprep.subr.bf16.mxu1 %v1089_v23 }
  0x3d   :  { %1092 = vmatpush3.bf16.msra.mxu0 %v1089_v23  ;;  %1188 = vmatpush3.bf16.msra.mxu1 %v1089_v23 }
  0x3e   :  { %1094 = vmatprep.subr.bf16.mxu0 %v1093_v26  ;;  %1190 = vmatprep.subr.bf16.mxu1 %v1093_v26 }
  0x41   :  { %1096 = vmatpush3.bf16.msra.mxu0 %v1093_v26  ;;  %1192 = vmatpush3.bf16.msra.mxu1 %v1093_v26 }
  0x42   :  { %1098 = vmatprep.subr.bf16.mxu0 %v1097_v29  ;;  %1194 = vmatprep.subr.bf16.mxu1 %v1097_v29 }
  0x44   :  { %891 = vmatmul.mubr.f32.vlgmr.msra.gmra.mrb[0].mxu0 %v1327_v33  ;;  %996 = vmatmul.mubr.f32.vlgmr.msra.gmra.mrb[0].mxu1 %v1330_v36 }
  0x45   :  { %1100 = vmatpush3.bf16.msra.mxu0 %v1097_v29  ;;  %1196 = vmatpush3.bf16.msra.mxu1 %v1097_v29 }
  0x46   :  { %1102 = vmatprep.subr.bf16.mxu0 %v1101_v38  ;;  %1198 = vmatprep.subr.bf16.mxu1 %v1101_v38 }
  0x47   :  { %925 = vmatprep.mubr.f32.mxu0 %v275_v41  ;;  %1030 = vmatprep.mubr.f32.mxu1 %v557_v42 }
  0x49   :  { %1104 = vmatpush3.bf16.msra.mxu0 %v1101_v38  ;;  %1200 = vmatpush3.bf16.msra.mxu1 %v1101_v38 }
  0x4a   :  { %1106 = vmatprep.subr.bf16.mxu0 %v1105_v43  ;;  %1202 = vmatprep.subr.bf16.mxu1 %v1105_v43 }
  0x4d   :  { %1108 = vmatpush3.bf16.msra.mxu0 %v1105_v43  ;;  %1204 = vmatpush3.bf16.msra.mxu1 %v1105_v43 }
  0x4e   :  { %1110 = vmatprep.subr.bf16.mxu0 %v1109_v46  ;;  %1206 = vmatprep.subr.bf16.mxu1 %v1109_v46 }
  0x51   :  { %1112 = vmatpush3.bf16.msra.mxu0 %v1109_v46  ;;  %1208 = vmatpush3.bf16.msra.mxu1 %v1109_v46 }
  0x52   :  { %1114 = vmatprep.subr.bf16.mxu0 %v1113_v49  ;;  %1210 = vmatprep.subr.bf16.mxu1 %v1113_v49 }
  0x55   :  { %1116 = vmatpush3.bf16.msra.mxu0 %v1113_v49  ;;  %1212 = vmatpush3.bf16.msra.mxu1 %v1113_v49 }
  0x56   :  { %1118 = vmatprep.subr.bf16.mxu0 %v1117_v52  ;;  %1214 = vmatprep.subr.bf16.mxu1 %v1117_v52 }
  0x59   :  { %1120 = vmatpush3.bf16.msra.mxu0 %v1117_v52  ;;  %1216 = vmatpush3.bf16.msra.mxu1 %v1117_v52 }
  0x5a   :  { %1122 = vmatprep.subr.bf16.mxu0 %v1121_v55  ;;  %1218 = vmatprep.subr.bf16.mxu1 %v1121_v55 }
  0x5d   :  { %1124 = vmatpush3.bf16.msra.mxu0 %v1121_v55  ;;  %1220 = vmatpush3.bf16.msra.mxu1 %v1121_v55 }
  0x5e   :  { %1126 = vmatprep.subr.bf16.mxu0 %v1125_v58  ;;  %1222 = vmatprep.subr.bf16.mxu1 %v1125_v58 }
  0x61   :  { %1128 = vmatpush3.bf16.msra.mxu0 %v1125_v58  ;;  %1224 = vmatpush3.bf16.msra.mxu1 %v1125_v58 }
  0x64   :  { %926 = vmatmul.mubr.f32.vlgmr.msra.gmra.mrb[0].mxu0 %v277_v63  ;;  %1031 = vmatmul.mubr.f32.vlgmr.msra.gmra.mrb[0].mxu1 %v559_v0 }
 0x137   :  { %v927_v33 = vpop.f32.mrb[0].mxu0  ;;  %v1032_v36 = vpop.f32.mrb[0].mxu1 }
 0x138   :  { %358 = vst [vmem:[%s1535_s4 + $0x9] sm:$0xff] %v927_v33  ;;  %v370_v61 = vmul.f32 %v927_v33, %v927_v33  ;;  %712 = vst [vmem:[%s1535_s4 + $0x21] sm:$0xff] %v1032_v36  ;;  %v653_v62 = vmul.f32 %v1032_v36, %v1032_v36  ;;  %v346_v2 = vpop.f32.mrb[1].mxu0  ;;  %v628_v3 = vpop.f32.mrb[1].mxu1 }
 0x139   :  { %357 = vst [vmem:[%s1535_s4 + $0x1] sm:$0xff] %v346_v2  ;;  %v361_v4 = vadd.f32 %v927_v33, %v346_v2  ;;  %v369_v5 = vmul.f32 %v346_v2, %v346_v2  ;;  %711 = vst [vmem:[%s1535_s4 + $0x19] sm:$0xff] %v628_v3  ;;  %v644_v6 = vadd.f32 %v1032_v36, %v628_v3 }
 0x13a   :  { %v652_v7 = vmul.f32 %v628_v3, %v628_v3 }
 0x13b   :  { %v362_v8 = vrot.slane %v361_v4, 4  ;;  %v371_v9 = vadd.f32 %v370_v61, %v369_v5  ;;  %v645_v10 = vrot.slane %v644_v6, 4 }
 0x13c   :  { %v654_v11 = vadd.f32 %v653_v62, %v652_v7 }
 0x13d   :  { %v363_v12 = vadd.f32 %v362_v8, %v361_v4  ;;  %v372_v13 = vrot.slane %v371_v9, 4  ;;  %v646_v15 = vadd.f32 %v645_v10, %v644_v6 }
 0x13e   :  { %v655_v16 = vrot.slane %v654_v11, 4 }
 0x13f   :  { %v364_v17 = vrot.slane %v363_v12, 2  ;;  %v373_v18 = vadd.f32 %v372_v13, %v371_v9  ;;  %v647_v14 = vrot.slane %v646_v15, 2 }
 0x140   :  { %v656_v19 = vadd.f32 %v655_v16, %v654_v11 }
 0x141   :  { %v365_v20 = vadd.f32 %v364_v17, %v363_v12  ;;  %v374_v21 = vrot.slane %v373_v18, 2  ;;  %v648_v22 = vadd.f32 %v647_v14, %v646_v15 }
 0x142   :  { %v657_v23 = vrot.slane %v656_v19, 2 }
 0x143   :  { %v366_v24 = vrot.slane %v365_v20, 1  ;;  %v375_v25 = vadd.f32 %v374_v21, %v373_v18  ;;  %v649_v26 = vrot.slane %v648_v22, 1 }
 0x144   :  { %v658_v27 = vadd.f32 %v657_v23, %v656_v19 }
 0x145   :  { %v367_v28 = vadd.f32 %v366_v24, %v365_v20  ;;  %v376_v29 = vrot.slane %v375_v25, 1  ;;  %v650_v30 = vadd.f32 %v649_v26, %v648_v22 }
 0x146   :  { %v659_v31 = vrot.slane %v658_v27, 1 }
 0x147   :  { %v377_v32 = vadd.f32 %v376_v29, %v375_v25  ;;  %v651_v34 = vadd.f32 %v650_v30, %v367_v28 }
 0x148   :  { %v660_v35 = vadd.f32 %v659_v31, %v658_v27 }
 0x149   :  { %662 = vst [vmem:[%s1536_s5] sm:$0x1] %v651_v34 }
 0x14a   :  { %v661_v37 = vadd.f32 %v660_v35, %v377_v32 }
 0x14c   :  { %663 = vst [vmem:[%s1536_s5 + $0x1] sm:$0x1] %v661_v37 }

// kernel: double_conv.5
= control target key start
LH: loop header
LB: loop body
LE: loop exit
PB: predicated region body
PF: predicated region fallthrough
CT: control target
= control target key end

     0   :  { %s126_s0 = inlined_call_operand.vmem [shape: f32[2,18,128], index: 0, kind: input, shape index: {}]   ;;  %s127_s1 = inlined_call_operand.vmem [shape: f32[1,128], index: 1, kind: input, shape index: {}]   ;;  %s128_s2 = inlined_call_operand.vmem [shape: f32[1,128], index: 2, kind: input, shape index: {}]   ;;  %s129_s3 = inlined_call_operand.vmem [shape: f32[2,16,128], index: 3, kind: output, shape index: {}]  }
   0x1   :  { %v14_v0 = vld [vmem:[%s126_s0] sm:$0xff]  ;;  %v15_v4 = vld [vmem:[%s126_s0 + $0x8] sm:$0xff]  ;;  %v16_v5 = vld [vmem:[%s126_s0 + $0x10] sm:$0x3] }
   0x2   :  { %v62_v1 = vld [vmem:[%s127_s1] ss:$0 sm:$0xff]  ;;  %v17_v6 = vld [vmem:[%s126_s0 + $0x18] sm:$0xff]  ;;  %v19_v11 = vld [vmem:[%s126_s0 + $0x28] sm:$0x3] }
   0x3   :  { %v63_v2 = vld [vmem:[%s128_s2] ss:$0 sm:$0xff]  ;;  %v27_v3 = vmul.f32 %v62_v1, %v14_v0  ;;  %v28_v7 = vmul.f32 %v62_v1, %v15_v4  ;;  %v29_v8 = vmul.f32 %v62_v1, %v16_v5  ;;  %v30_v9 = vmul.f32 %v62_v1, %v17_v6 }
   0x4   :  { %v18_v10 = vld [vmem:[%s126_s0 + $0x20] sm:$0xff]  ;;  %v32_v14 = vmul.f32 %v62_v1, %v19_v11 }
   0x5   :  { %v40_v12 = vadd.f32 %v63_v2, %v27_v3  ;;  %v31_v13 = vmul.f32 %v62_v1, %v18_v10  ;;  %v41_v15 = vadd.f32 %v63_v2, %v28_v7  ;;  %v42_v16 = vadd.f32 %v63_v2, %v29_v8 }
   0x6   :  { %v43_v17 = vadd.f32 %v63_v2, %v30_v9  ;;  %v45_v20 = vadd.f32 %v63_v2, %v32_v14 }
   0x7   :  { %v46_v18 = vmax.f32 %v40_v12, 0.0  ;;  %v44_v19 = vadd.f32 %v63_v2, %v31_v13  ;;  %v47_v21 = vmax.f32 %v41_v15, 0.0  ;;  %v48_v22 = vmax.f32 %v42_v16, 0.0 }
   0x8   :  { %v49_v23 = vmax.f32 %v43_v17, 0.0  ;;  %v51_v25 = vmax.f32 %v45_v20, 0.0 }
   0x9   :  { %52 = vst [vmem:[%s129_s3 - $0x1] sm:$0xfe] %v46_v18  ;;  %v50_v24 = vmax.f32 %v44_v19, 0.0  ;;  %53 = vst [vmem:[%s129_s3 + $0x7] sm:$0xff] %v47_v21 }
   0xa   :  { %54 = vst [vmem:[%s129_s3 + $0xf] sm:$0x1] %v48_v22  ;;  %55 = vst [vmem:[%s129_s3 + $0xf] sm:$0xfe] %v49_v23 }
   0xb   :  { %56 = vst [vmem:[%s129_s3 + $0x17] sm:$0xff] %v50_v24  ;;  %57 = vst [vmem:[%s129_s3 + $0x1f] sm:$0x1] %v51_v25 }

</bundles_post_ra>
